<compile_context>
chip_gen: v6e
topology: v6e:2x2x1
jax: 0.10.0
libtpu: 0.0.40
codegen_flags: <defaults>
</compile_context>

<pallas_src>
import functools
import math

import jax
import jax.numpy as jnp
from jax import lax
from jax.experimental import pallas as pl
from jax.experimental.pallas import tpu as pltpu


def _prenorm_mha_kernel(x_ref, vecs_ref, wq_ref, wk_ref, wv_ref, o_ref,
                        *, num_heads, eps, use_bf16):
    B_blk, S, D = x_ref.shape
    H = num_heads
    Dh = D // H
    rows = B_blk * S

    # ---- Load and flatten batch*seq: LN + projections see one tall matrix ----
    x = x_ref[...].reshape(rows, D)            # leading-dim collapse (free)

    vecs = vecs_ref[...]                       # (5, D): gamma, beta, bq, bk, bv
    gamma, beta = vecs[0:1], vecs[1:2]
    bq, bk, bv = vecs[2:3], vecs[3:4], vecs[4:5]

    # ---- LayerNorm (PyTorch semantics: biased variance, eps inside sqrt) ----
    mean = jnp.mean(x, axis=-1, keepdims=True)
    xc = x - mean
    var = jnp.mean(xc * xc, axis=-1, keepdims=True)
    xn = xc * lax.rsqrt(var + eps)             # EUP rsqrt
    xn = xn * gamma + beta                     # (rows, D), f32

    # ---- Q/K/V projections: full-width MXU matmuls, f32 accumulation ----
    mm_dtype = wq_ref.dtype                    # f32, or bf16 when use_bf16
    xn_mm = xn.astype(mm_dtype)
    q = jnp.dot(xn_mm, wq_ref[...], preferred_element_type=jnp.float32) + bq
    k = jnp.dot(xn_mm, wk_ref[...], preferred_element_type=jnp.float32) + bk
    v = jnp.dot(xn_mm, wv_ref[...], preferred_element_type=jnp.float32) + bv

    # Scale q once (rows x D work) instead of the (S, S) score matrices.
    q = q * (1.0 / math.sqrt(float(Dh)))

    # ---- Head-batched attention: head axis is a batch dim of dot_general ----
    def split_heads(t):
        # Static sublane/lane slices gathered into one (B_blk*H, S, Dh) tensor.
        return jnp.stack(
            [t[b * S:(b + 1) * S, h * Dh:(h + 1) * Dh]
             for b in range(B_blk) for h in range(H)], axis=0)

    qh, kh, vh = split_heads(q), split_heads(k), split_heads(v)

    # q @ k^T with no explicit transpose (contract the last dims of both).
    scores = jnp.einsum('bqd,bkd->bqk', qh, kh,
                        preferred_element_type=jnp.float32)      # (BH, S, S)
    m = jnp.max(scores, axis=-1, keepdims=True)
    e = jnp.exp(scores - m)
    denom = jnp.sum(e, axis=-1, keepdims=True)
    inv = pl.reciprocal(denom, approx=True)    # EUP slot
    inv = inv * (2.0 - denom * inv)            # one Newton step (denom >= 1)
    p = e * inv

    if use_bf16:
        p = p.astype(jnp.bfloat16)
        vh = vh.astype(jnp.bfloat16)
    out = jnp.einsum('bqk,bkd->bqd', p, vh,
                     preferred_element_type=jnp.float32)         # (BH, S, Dh)

    # ---- Merge heads back to (B_blk, S, D) and store ----
    # Lane-dense automatically once d_model is a >=128 multiple; at D=32 the
    # store is a masked vst, which is cheaper than an (S,D)->(S*D,) relayout.
    merged = jnp.stack(
        [jnp.concatenate([out[b * H + h] for h in range(H)], axis=-1)
         for b in range(B_blk)], axis=0)
    o_ref[...] = merged.astype(o_ref.dtype)


def prenorm_self_attention(x, params, num_heads, *, eps=1e-5, use_bf16=False,
                           batch_block=None):
    """PreNorm(dim, MultiHeadSelfAttention).forward via one fused Pallas kernel.

    x      : (B, S, d_model) float32
    params : dict with LayerNorm 'gamma','beta' (d_model,), projection weights
             'wq','wk','wv' (d_model, d_model)  ["x @ W" orientation]  and
             biases 'bq','bk','bv' (d_model,).
    use_bf16: cast MXU operands (weights + activations at the matmuls) to bf16
             with f32 accumulation.  Recommended on v6e/v7x; requires a looser
             reference tolerance (~1e-1) than the f32 path (1e-4).
    returns: (B * num_heads, S, head_dim) float32 (split-heads layout, matching
             the reference MHA forward; W_o / concat_heads are not applied).
    """
    B, S, D = x.shape
    assert D % num_heads == 0
    H = num_heads
    Dh = D // H

    if batch_block is None:
        # Batch several elements per grid step (amortize ~0.35us/step pipeline
        # overhead, fill MXU sublanes) while keeping >=2 "parallel" steps so
        # v7x can shard the grid across its 2 TensorCores.
        batch_block = max(1, B // 2)
    assert B % batch_block == 0, (B, batch_block)
    grid_b = B // batch_block

    f32 = jnp.float32
    w_dtype = jnp.bfloat16 if use_bf16 else f32
    # Coalesce the five (D,) vectors into a single resident (5, D) operand.
    vecs = jnp.stack([params["gamma"], params["beta"],
                      params["bq"], params["bk"], params["bv"]],
                     axis=0).astype(f32)
    wq = params["wq"].astype(w_dtype)
    wk = params["wk"].astype(w_dtype)
    wv = params["wv"].astype(w_dtype)
    x = x.astype(f32)

    kernel = functools.partial(_prenorm_mha_kernel, num_heads=H, eps=eps,
                               use_bf16=use_bf16)

    # Rough resident-VMEM estimate; raise the scoped limit only when the
    # defaults (16 MiB v5e / 32 MiB v6e,v7x) would be exceeded at larger D/S.
    wbytes = 2 if use_bf16 else 4
    est = (2 * 2 * batch_block * S * D * 4           # x + out, double buffered
           + 3 * D * D * wbytes + 5 * D * 4          # resident weights + vecs
           + 3 * batch_block * H * S * S * 4         # scores / exp temporaries
           + 8 * batch_block * S * D * 4)            # xn / q / k / v etc.
    vmem_limit = (int(min(2 * est, 96 * 1024 * 1024))
                  if est > 12 * 1024 * 1024 else None)

    def build(single_buffer_consts):
        const_kwargs = ({"pipeline_mode": pl.Buffered(1)}
                        if single_buffer_consts else {})
        x_spec = pl.BlockSpec((batch_block, S, D), lambda b: (b, 0, 0))
        o_spec = pl.BlockSpec((batch_block, S, D), lambda b: (b, 0, 0))
        # Constant index maps: weights / LN params / biases are DMA'd once and
        # stay resident across the whole batch grid.
        w_spec = pl.BlockSpec((D, D), lambda b: (0, 0), **const_kwargs)
        vec_spec = pl.BlockSpec((5, D), lambda b: (0, 0), **const_kwargs)
        return pl.pallas_call(
            kernel,
            out_shape=jax.ShapeDtypeStruct((B, S, D), jnp.float32),
            grid_spec=pltpu.PrefetchScalarGridSpec(
                num_scalar_prefetch=0,
                grid=(grid_b,),
                in_specs=[x_spec, vec_spec, w_spec, w_spec, w_spec],
                out_specs=o_spec),
            compiler_params=pltpu.CompilerParams(
                dimension_semantics=("parallel",),
                vmem_limit_bytes=vmem_limit),
        )

    try:
        # Single-buffer the constant operands (no double-buffering needed for
        # constant index_maps; halves their VMEM footprint at production D).
        out = build(True)(x, vecs, wq, wk, wv)
    except Exception:
        # Fallback if this Pallas build rejects pipeline_mode=pl.Buffered(1).
        out = build(False)(x, vecs, wq, wk, wv)

    # Split-heads layout done in plain JAX (free layout plumbing).
    return out.reshape(B, S, H, Dh).transpose(0, 2, 1, 3).reshape(
        B * H, S, Dh)


def _reference(x, params, num_heads, eps=1e-5):
    """Pure-JAX reference mirroring PreNorm(LayerNorm) -> MHA self-attention."""
    B, S, D = x.shape
    head_dim = D // num_heads

    mean = jnp.mean(x, axis=-1, keepdims=True)
    var = jnp.mean((x - mean) ** 2, axis=-1, keepdims=True)
    xn = (x - mean) / jnp.sqrt(var + eps) * params["gamma"] + params["beta"]

    def proj(w, b):
        return xn @ w + b

    def split_heads(t):
        t = t.reshape(B, S, num_heads, head_dim).transpose(0, 2, 1, 3)
        return t.reshape(B * num_heads, S, head_dim)

    q = split_heads(proj(params["wq"], params["bq"]))
    k = split_heads(proj(params["wk"], params["bk"]))
    v = split_heads(proj(params["wv"], params["bv"]))

    scores = jnp.einsum("bqd,bkd->bqk", q, k) / jnp.sqrt(
        jnp.asarray(head_dim, jnp.float32))
    w = jax.nn.softmax(scores, axis=-1)
    return jnp.einsum("bqk,bkd->bqd", w, v)


if __name__ == "__main__":
    d_model = 32
    num_heads = 4
    B, S = 4, 8          # B=4 -> batch_block=2, grid=(2,): 2 parallel steps

    key = jax.random.PRNGKey(0)
    kx, kg, kb, k1, k2, k3, k4, k5, k6 = jax.random.split(key, 9)

    x = jax.random.normal(kx, (B, S, d_model), dtype=jnp.float32)

    scale = 1.0 / math.sqrt(d_model)
    params = {
        "gamma": 1.0 + 0.1 * jax.random.normal(kg, (d_model,), jnp.float32),
        "beta": 0.1 * jax.random.normal(kb, (d_model,), jnp.float32),
        "wq": jax.random.normal(k1, (d_model, d_model), jnp.float32) * scale,
        "wk": jax.random.normal(k2, (d_model, d_model), jnp.float32) * scale,
        "wv": jax.random.normal(k3, (d_model, d_model), jnp.float32) * scale,
        "bq": jax.random.normal(k4, (d_model,), jnp.float32) * scale,
        "bk": jax.random.normal(k5, (d_model,), jnp.float32) * scale,
        "bv": jax.random.normal(k6, (d_model,), jnp.float32) * scale,
    }

    ref = _reference(x, params, num_heads)

    # f32 path: strict check (approx-reciprocal + Newton step is ~f32 exact).
    out = prenorm_self_attention(x, params, num_heads)
    out = jax.block_until_ready(out)
    assert out.shape == (B * num_heads, S, d_model // num_heads), out.shape
    err = float(jnp.max(jnp.abs(out - ref)))
    assert jnp.allclose(out, ref, atol=1e-4, rtol=1e-4), err

    # bf16 MXU-operand path (v6e/v7x default recommendation): loose tolerance.
    out_bf16 = prenorm_self_attention(x, params, num_heads, use_bf16=True)
    out_bf16 = jax.block_until_ready(out_bf16)
    err_bf16 = float(jnp.max(jnp.abs(out_bf16 - ref)))
    assert err_bf16 < 0.25, err_bf16

    print("KERNEL_OK")
</pallas_src>

<mosaic_0001>
module attributes {stable_mosaic.version = 11 : i64} {
  func.func @_prenorm_mha_kernel(%arg0: i32, %arg1: memref<2x8x32xf32, #tpu.memory_space<vmem>>, %arg2: memref<5x32xf32, #tpu.memory_space<vmem>>, %arg3: memref<32x32xf32, #tpu.memory_space<vmem>>, %arg4: memref<32x32xf32, #tpu.memory_space<vmem>>, %arg5: memref<32x32xf32, #tpu.memory_space<vmem>>, %arg6: memref<2x8x32xf32, #tpu.memory_space<vmem>>) attributes {dimension_semantics = [#tpu.dimension_semantics<parallel>], iteration_bounds = array<i64: 2>, scalar_prefetch = 0 : i64, scratch_operands = 0 : i64, tpu.core_type = #tpu.core_type<tc>, window_params = [{transform_indices = @transform_0, window_bounds = array<i64: 2, 8, 32>}, {pipeline_mode = #tpu.pipeline_mode<synchronous>, transform_indices = @transform_1, window_bounds = array<i64: 5, 32>}, {pipeline_mode = #tpu.pipeline_mode<synchronous>, transform_indices = @transform_2, window_bounds = array<i64: 32, 32>}, {pipeline_mode = #tpu.pipeline_mode<synchronous>, transform_indices = @transform_3, window_bounds = array<i64: 32, 32>}, {pipeline_mode = #tpu.pipeline_mode<synchronous>, transform_indices = @transform_4, window_bounds = array<i64: 32, 32>}, {transform_indices = @transform_5, window_bounds = array<i64: 2, 8, 32>}]} {
    %c0 = arith.constant 0 : index
    %c0_0 = arith.constant 0 : index
    %c0_1 = arith.constant 0 : index
    %0 = vector.load %arg1[%c0, %c0_0, %c0_1] : memref<2x8x32xf32, #tpu.memory_space<vmem>>, vector<2x8x32xf32>
    %1 = vector.shape_cast %0 : vector<2x8x32xf32> to vector<16x32xf32>
    %c0_2 = arith.constant 0 : index
    %c0_3 = arith.constant 0 : index
    %2 = vector.load %arg2[%c0_2, %c0_3] : memref<5x32xf32, #tpu.memory_space<vmem>>, vector<5x32xf32>
    %3 = vector.extract_strided_slice %2 {offsets = [0, 0], sizes = [1, 32], strides = [1, 1]} : vector<5x32xf32> to vector<1x32xf32>
    %4 = vector.extract_strided_slice %2 {offsets = [1, 0], sizes = [1, 32], strides = [1, 1]} : vector<5x32xf32> to vector<1x32xf32>
    %5 = vector.extract_strided_slice %2 {offsets = [2, 0], sizes = [1, 32], strides = [1, 1]} : vector<5x32xf32> to vector<1x32xf32>
    %6 = vector.extract_strided_slice %2 {offsets = [3, 0], sizes = [1, 32], strides = [1, 1]} : vector<5x32xf32> to vector<1x32xf32>
    %7 = vector.extract_strided_slice %2 {offsets = [4, 0], sizes = [1, 32], strides = [1, 1]} : vector<5x32xf32> to vector<1x32xf32>
    %cst = arith.constant dense<0.000000e+00> : vector<16xf32>
    %8 = vector.multi_reduction <add>, %1, %cst [1] : vector<16x32xf32> to vector<16xf32>
    %9 = vector.shape_cast %8 : vector<16xf32> to vector<16x1xf32>
    %cst_4 = arith.constant 3.200000e+01 : f32
    %10 = vector.broadcast %cst_4 : f32 to vector<16x1xf32>
    %11 = arith.divf %9, %10 : vector<16x1xf32>
    %12 = vector.broadcast %11 : vector<16x1xf32> to vector<16x32xf32>
    %13 = arith.subf %1, %12 : vector<16x32xf32>
    %14 = arith.mulf %13, %13 : vector<16x32xf32>
    %cst_5 = arith.constant dense<0.000000e+00> : vector<16xf32>
    %15 = vector.multi_reduction <add>, %14, %cst_5 [1] : vector<16x32xf32> to vector<16xf32>
    %16 = vector.shape_cast %15 : vector<16xf32> to vector<16x1xf32>
    %cst_6 = arith.constant 3.200000e+01 : f32
    %17 = vector.broadcast %cst_6 : f32 to vector<16x1xf32>
    %18 = arith.divf %16, %17 : vector<16x1xf32>
    %cst_7 = arith.constant 9.99999974E-6 : f32
    %19 = vector.broadcast %cst_7 : f32 to vector<16x1xf32>
    %20 = arith.addf %18, %19 : vector<16x1xf32>
    %21 = math.rsqrt %20 : vector<16x1xf32>
    %22 = vector.broadcast %21 : vector<16x1xf32> to vector<16x32xf32>
    %23 = arith.mulf %13, %22 : vector<16x32xf32>
    %24 = vector.broadcast %3 : vector<1x32xf32> to vector<16x32xf32>
    %25 = arith.mulf %23, %24 : vector<16x32xf32>
    %26 = vector.broadcast %4 : vector<1x32xf32> to vector<16x32xf32>
    %27 = arith.addf %25, %26 : vector<16x32xf32>
    %c0_8 = arith.constant 0 : index
    %c0_9 = arith.constant 0 : index
    %28 = vector.load %arg3[%c0_8, %c0_9] : memref<32x32xf32, #tpu.memory_space<vmem>>, vector<32x32xf32>
    %cst_10 = arith.constant dense<0.000000e+00> : vector<16x32xf32>
    %29 = tpu.matmul %27, %28, %cst_10 {dimension_numbers = #tpu.dot_dimension_numbers<[1], [0], [0], [1], [0, 0, 1, 1], [], []>} : vector<16x32xf32>, vector<32x32xf32>, vector<16x32xf32> -> vector<16x32xf32>
    %30 = vector.broadcast %5 : vector<1x32xf32> to vector<16x32xf32>
    %31 = arith.addf %29, %30 : vector<16x32xf32>
    %c0_11 = arith.constant 0 : index
    %c0_12 = arith.constant 0 : index
    %32 = vector.load %arg4[%c0_11, %c0_12] : memref<32x32xf32, #tpu.memory_space<vmem>>, vector<32x32xf32>
    %cst_13 = arith.constant dense<0.000000e+00> : vector<16x32xf32>
    %33 = tpu.matmul %27, %32, %cst_13 {dimension_numbers = #tpu.dot_dimension_numbers<[1], [0], [0], [1], [0, 0, 1, 1], [], []>} : vector<16x32xf32>, vector<32x32xf32>, vector<16x32xf32> -> vector<16x32xf32>
    %34 = vector.broadcast %6 : vector<1x32xf32> to vector<16x32xf32>
    %35 = arith.addf %33, %34 : vector<16x32xf32>
    %c0_14 = arith.constant 0 : index
    %c0_15 = arith.constant 0 : index
    %36 = vector.load %arg5[%c0_14, %c0_15] : memref<32x32xf32, #tpu.memory_space<vmem>>, vector<32x32xf32>
    %cst_16 = arith.constant dense<0.000000e+00> : vector<16x32xf32>
    %37 = tpu.matmul %27, %36, %cst_16 {dimension_numbers = #tpu.dot_dimension_numbers<[1], [0], [0], [1], [0, 0, 1, 1], [], []>} : vector<16x32xf32>, vector<32x32xf32>, vector<16x32xf32> -> vector<16x32xf32>
    %38 = vector.broadcast %7 : vector<1x32xf32> to vector<16x32xf32>
    %39 = arith.addf %37, %38 : vector<16x32xf32>
    %cst_17 = arith.constant 0.353553385 : f32
    %40 = vector.broadcast %cst_17 : f32 to vector<16x32xf32>
    %41 = arith.mulf %31, %40 : vector<16x32xf32>
    %42 = vector.extract_strided_slice %41 {offsets = [0, 0], sizes = [8, 8], strides = [1, 1]} : vector<16x32xf32> to vector<8x8xf32>
    %43 = vector.extract_strided_slice %41 {offsets = [0, 8], sizes = [8, 8], strides = [1, 1]} : vector<16x32xf32> to vector<8x8xf32>
    %44 = vector.extract_strided_slice %41 {offsets = [0, 16], sizes = [8, 8], strides = [1, 1]} : vector<16x32xf32> to vector<8x8xf32>
    %45 = vector.extract_strided_slice %41 {offsets = [0, 24], sizes = [8, 8], strides = [1, 1]} : vector<16x32xf32> to vector<8x8xf32>
    %46 = vector.extract_strided_slice %41 {offsets = [8, 0], sizes = [8, 8], strides = [1, 1]} : vector<16x32xf32> to vector<8x8xf32>
    %47 = vector.extract_strided_slice %41 {offsets = [8, 8], sizes = [8, 8], strides = [1, 1]} : vector<16x32xf32> to vector<8x8xf32>
    %48 = vector.extract_strided_slice %41 {offsets = [8, 16], sizes = [8, 8], strides = [1, 1]} : vector<16x32xf32> to vector<8x8xf32>
    %49 = vector.extract_strided_slice %41 {offsets = [8, 24], sizes = [8, 8], strides = [1, 1]} : vector<16x32xf32> to vector<8x8xf32>
    %50 = vector.shape_cast %42 : vector<8x8xf32> to vector<1x8x8xf32>
    %51 = vector.shape_cast %43 : vector<8x8xf32> to vector<1x8x8xf32>
    %52 = vector.shape_cast %44 : vector<8x8xf32> to vector<1x8x8xf32>
    %53 = vector.shape_cast %45 : vector<8x8xf32> to vector<1x8x8xf32>
    %54 = vector.shape_cast %46 : vector<8x8xf32> to vector<1x8x8xf32>
    %55 = vector.shape_cast %47 : vector<8x8xf32> to vector<1x8x8xf32>
    %56 = vector.shape_cast %48 : vector<8x8xf32> to vector<1x8x8xf32>
    %57 = vector.shape_cast %49 : vector<8x8xf32> to vector<1x8x8xf32>
    %58 = tpu.concatenate %50, %51, %52, %53, %54, %55, %56, %57 in 0 : vector<1x8x8xf32>, vector<1x8x8xf32>, vector<1x8x8xf32>, vector<1x8x8xf32>, vector<1x8x8xf32>, vector<1x8x8xf32>, vector<1x8x8xf32>, vector<1x8x8xf32> -> vector<8x8x8xf32>
    %59 = vector.extract_strided_slice %35 {offsets = [0, 0], sizes = [8, 8], strides = [1, 1]} : vector<16x32xf32> to vector<8x8xf32>
    %60 = vector.extract_strided_slice %35 {offsets = [0, 8], sizes = [8, 8], strides = [1, 1]} : vector<16x32xf32> to vector<8x8xf32>
    %61 = vector.extract_strided_slice %35 {offsets = [0, 16], sizes = [8, 8], strides = [1, 1]} : vector<16x32xf32> to vector<8x8xf32>
    %62 = vector.extract_strided_slice %35 {offsets = [0, 24], sizes = [8, 8], strides = [1, 1]} : vector<16x32xf32> to vector<8x8xf32>
    %63 = vector.extract_strided_slice %35 {offsets = [8, 0], sizes = [8, 8], strides = [1, 1]} : vector<16x32xf32> to vector<8x8xf32>
    %64 = vector.extract_strided_slice %35 {offsets = [8, 8], sizes = [8, 8], strides = [1, 1]} : vector<16x32xf32> to vector<8x8xf32>
    %65 = vector.extract_strided_slice %35 {offsets = [8, 16], sizes = [8, 8], strides = [1, 1]} : vector<16x32xf32> to vector<8x8xf32>
    %66 = vector.extract_strided_slice %35 {offsets = [8, 24], sizes = [8, 8], strides = [1, 1]} : vector<16x32xf32> to vector<8x8xf32>
    %67 = vector.shape_cast %59 : vector<8x8xf32> to vector<1x8x8xf32>
    %68 = vector.shape_cast %60 : vector<8x8xf32> to vector<1x8x8xf32>
    %69 = vector.shape_cast %61 : vector<8x8xf32> to vector<1x8x8xf32>
    %70 = vector.shape_cast %62 : vector<8x8xf32> to vector<1x8x8xf32>
    %71 = vector.shape_cast %63 : vector<8x8xf32> to vector<1x8x8xf32>
    %72 = vector.shape_cast %64 : vector<8x8xf32> to vector<1x8x8xf32>
    %73 = vector.shape_cast %65 : vector<8x8xf32> to vector<1x8x8xf32>
    %74 = vector.shape_cast %66 : vector<8x8xf32> to vector<1x8x8xf32>
    %75 = tpu.concatenate %67, %68, %69, %70, %71, %72, %73, %74 in 0 : vector<1x8x8xf32>, vector<1x8x8xf32>, vector<1x8x8xf32>, vector<1x8x8xf32>, vector<1x8x8xf32>, vector<1x8x8xf32>, vector<1x8x8xf32>, vector<1x8x8xf32> -> vector<8x8x8xf32>
    %76 = vector.extract_strided_slice %39 {offsets = [0, 0], sizes = [8, 8], strides = [1, 1]} : vector<16x32xf32> to vector<8x8xf32>
    %77 = vector.extract_strided_slice %39 {offsets = [0, 8], sizes = [8, 8], strides = [1, 1]} : vector<16x32xf32> to vector<8x8xf32>
    %78 = vector.extract_strided_slice %39 {offsets = [0, 16], sizes = [8, 8], strides = [1, 1]} : vector<16x32xf32> to vector<8x8xf32>
    %79 = vector.extract_strided_slice %39 {offsets = [0, 24], sizes = [8, 8], strides = [1, 1]} : vector<16x32xf32> to vector<8x8xf32>
    %80 = vector.extract_strided_slice %39 {offsets = [8, 0], sizes = [8, 8], strides = [1, 1]} : vector<16x32xf32> to vector<8x8xf32>
    %81 = vector.extract_strided_slice %39 {offsets = [8, 8], sizes = [8, 8], strides = [1, 1]} : vector<16x32xf32> to vector<8x8xf32>
    %82 = vector.extract_strided_slice %39 {offsets = [8, 16], sizes = [8, 8], strides = [1, 1]} : vector<16x32xf32> to vector<8x8xf32>
    %83 = vector.extract_strided_slice %39 {offsets = [8, 24], sizes = [8, 8], strides = [1, 1]} : vector<16x32xf32> to vector<8x8xf32>
    %84 = vector.shape_cast %76 : vector<8x8xf32> to vector<1x8x8xf32>
    %85 = vector.shape_cast %77 : vector<8x8xf32> to vector<1x8x8xf32>
    %86 = vector.shape_cast %78 : vector<8x8xf32> to vector<1x8x8xf32>
    %87 = vector.shape_cast %79 : vector<8x8xf32> to vector<1x8x8xf32>
    %88 = vector.shape_cast %80 : vector<8x8xf32> to vector<1x8x8xf32>
    %89 = vector.shape_cast %81 : vector<8x8xf32> to vector<1x8x8xf32>
    %90 = vector.shape_cast %82 : vector<8x8xf32> to vector<1x8x8xf32>
    %91 = vector.shape_cast %83 : vector<8x8xf32> to vector<1x8x8xf32>
    %92 = tpu.concatenate %84, %85, %86, %87, %88, %89, %90, %91 in 0 : vector<1x8x8xf32>, vector<1x8x8xf32>, vector<1x8x8xf32>, vector<1x8x8xf32>, vector<1x8x8xf32>, vector<1x8x8xf32>, vector<1x8x8xf32>, vector<1x8x8xf32> -> vector<8x8x8xf32>
    "tpu.trace_start"() <{level = 10 : i32, message = "bqd,bkd->bqk"}> : () -> ()
    %cst_18 = arith.constant dense<0.000000e+00> : vector<8x8x8xf32>
    %93 = tpu.matmul %58, %75, %cst_18 {dimension_numbers = #tpu.dot_dimension_numbers<[2], [2], [1], [1], [0, 0, 0, 1, 1, 1], [0], [0]>} : vector<8x8x8xf32>, vector<8x8x8xf32>, vector<8x8x8xf32> -> vector<8x8x8xf32>
    "tpu.trace_stop"() : () -> ()
    %cst_19 = arith.constant dense<0xFF800000> : vector<8x8xf32>
    %94 = vector.multi_reduction <maximumf>, %93, %cst_19 [2] : vector<8x8x8xf32> to vector<8x8xf32>
    %95 = vector.shape_cast %94 : vector<8x8xf32> to vector<8x8x1xf32>
    %96 = vector.broadcast %95 : vector<8x8x1xf32> to vector<8x8x8xf32>
    %97 = arith.subf %93, %96 : vector<8x8x8xf32>
    %98 = math.exp %97 : vector<8x8x8xf32>
    %cst_20 = arith.constant dense<0.000000e+00> : vector<8x8xf32>
    %99 = vector.multi_reduction <add>, %98, %cst_20 [2] : vector<8x8x8xf32> to vector<8x8xf32>
    %100 = vector.shape_cast %99 : vector<8x8xf32> to vector<8x8x1xf32>
    %101 = tpu.reciprocal %100 {approx = true} : vector<8x8x1xf32> -> vector<8x8x1xf32>
    %102 = arith.mulf %100, %101 : vector<8x8x1xf32>
    %cst_21 = arith.constant 2.000000e+00 : f32
    %103 = vector.broadcast %cst_21 : f32 to vector<8x8x1xf32>
    %104 = arith.subf %103, %102 : vector<8x8x1xf32>
    %105 = arith.mulf %101, %104 : vector<8x8x1xf32>
    %106 = vector.broadcast %105 : vector<8x8x1xf32> to vector<8x8x8xf32>
    %107 = arith.mulf %98, %106 : vector<8x8x8xf32>
    "tpu.trace_start"() <{level = 10 : i32, message = "bqk,bkd->bqd"}> : () -> ()
    %cst_22 = arith.constant dense<0.000000e+00> : vector<8x8x8xf32>
    %108 = tpu.matmul %107, %92, %cst_22 {dimension_numbers = #tpu.dot_dimension_numbers<[2], [1], [1], [2], [0, 0, 0, 1, 1, 2], [0], [0]>} : vector<8x8x8xf32>, vector<8x8x8xf32>, vector<8x8x8xf32> -> vector<8x8x8xf32>
    "tpu.trace_stop"() : () -> ()
    %109 = vector.extract_strided_slice %108 {offsets = [0, 0, 0], sizes = [1, 8, 8], strides = [1, 1, 1]} : vector<8x8x8xf32> to vector<1x8x8xf32>
    %110 = vector.shape_cast %109 : vector<1x8x8xf32> to vector<8x8xf32>
    %111 = vector.extract_strided_slice %108 {offsets = [1, 0, 0], sizes = [1, 8, 8], strides = [1, 1, 1]} : vector<8x8x8xf32> to vector<1x8x8xf32>
    %112 = vector.shape_cast %111 : vector<1x8x8xf32> to vector<8x8xf32>
    %113 = vector.extract_strided_slice %108 {offsets = [2, 0, 0], sizes = [1, 8, 8], strides = [1, 1, 1]} : vector<8x8x8xf32> to vector<1x8x8xf32>
    %114 = vector.shape_cast %113 : vector<1x8x8xf32> to vector<8x8xf32>
    %115 = vector.extract_strided_slice %108 {offsets = [3, 0, 0], sizes = [1, 8, 8], strides = [1, 1, 1]} : vector<8x8x8xf32> to vector<1x8x8xf32>
    %116 = vector.shape_cast %115 : vector<1x8x8xf32> to vector<8x8xf32>
    %117 = tpu.concatenate %110, %112, %114, %116 in 1 : vector<8x8xf32>, vector<8x8xf32>, vector<8x8xf32>, vector<8x8xf32> -> vector<8x32xf32>
    %118 = vector.extract_strided_slice %108 {offsets = [4, 0, 0], sizes = [1, 8, 8], strides = [1, 1, 1]} : vector<8x8x8xf32> to vector<1x8x8xf32>
    %119 = vector.shape_cast %118 : vector<1x8x8xf32> to vector<8x8xf32>
    %120 = vector.extract_strided_slice %108 {offsets = [5, 0, 0], sizes = [1, 8, 8], strides = [1, 1, 1]} : vector<8x8x8xf32> to vector<1x8x8xf32>
    %121 = vector.shape_cast %120 : vector<1x8x8xf32> to vector<8x8xf32>
    %122 = vector.extract_strided_slice %108 {offsets = [6, 0, 0], sizes = [1, 8, 8], strides = [1, 1, 1]} : vector<8x8x8xf32> to vector<1x8x8xf32>
    %123 = vector.shape_cast %122 : vector<1x8x8xf32> to vector<8x8xf32>
    %124 = vector.extract_strided_slice %108 {offsets = [7, 0, 0], sizes = [1, 8, 8], strides = [1, 1, 1]} : vector<8x8x8xf32> to vector<1x8x8xf32>
    %125 = vector.shape_cast %124 : vector<1x8x8xf32> to vector<8x8xf32>
    %126 = tpu.concatenate %119, %121, %123, %125 in 1 : vector<8x8xf32>, vector<8x8xf32>, vector<8x8xf32>, vector<8x8xf32> -> vector<8x32xf32>
    %127 = vector.shape_cast %117 : vector<8x32xf32> to vector<1x8x32xf32>
    %128 = vector.shape_cast %126 : vector<8x32xf32> to vector<1x8x32xf32>
    %129 = tpu.concatenate %127, %128 in 0 : vector<1x8x32xf32>, vector<1x8x32xf32> -> vector<2x8x32xf32>
    %c0_23 = arith.constant 0 : index
    %c0_24 = arith.constant 0 : index
    %c0_25 = arith.constant 0 : index
    %130 = vector.load %arg6[%c0_23, %c0_24, %c0_25] : memref<2x8x32xf32, #tpu.memory_space<vmem>>, vector<2x8x32xf32>
    tpu.vector_store %arg6[%c0_23, %c0_24, %c0_25], %129 {strides = array<i32>} : memref<2x8x32xf32, #tpu.memory_space<vmem>>, vector<2x8x32xf32>,
    return
  }
  func.func @transform_0(%arg0: i32) -> (i32, i32, i32) {
    %c0_i32 = arith.constant 0 : i32
    %c0_i32_0 = arith.constant 0 : i32
    %c0_i32_1 = arith.constant 0 : i32
    return %arg0, %c0_i32, %c0_i32_0 : i32, i32, i32
  }
  func.func @transform_1(%arg0: i32) -> (i32, i32) {
    %c0_i32 = arith.constant 0 : i32
    %c0_i32_0 = arith.constant 0 : i32
    %c0_i32_1 = arith.constant 0 : i32
    return %c0_i32, %c0_i32_0 : i32, i32
  }
  func.func @transform_2(%arg0: i32) -> (i32, i32) {
    %c0_i32 = arith.constant 0 : i32
    %c0_i32_0 = arith.constant 0 : i32
    %c0_i32_1 = arith.constant 0 : i32
    return %c0_i32, %c0_i32_0 : i32, i32
  }
  func.func @transform_3(%arg0: i32) -> (i32, i32) {
    %c0_i32 = arith.constant 0 : i32
    %c0_i32_0 = arith.constant 0 : i32
    %c0_i32_1 = arith.constant 0 : i32
    return %c0_i32, %c0_i32_0 : i32, i32
  }
  func.func @transform_4(%arg0: i32) -> (i32, i32) {
    %c0_i32 = arith.constant 0 : i32
    %c0_i32_0 = arith.constant 0 : i32
    %c0_i32_1 = arith.constant 0 : i32
    return %c0_i32, %c0_i32_0 : i32, i32
  }
  func.func @transform_5(%arg0: i32) -> (i32, i32, i32) {
    %c0_i32 = arith.constant 0 : i32
    %c0_i32_0 = arith.constant 0 : i32
    %c0_i32_1 = arith.constant 0 : i32
    return %arg0, %c0_i32, %c0_i32_0 : i32, i32, i32
  }
}

module attributes {stable_mosaic.version = 11 : i64} {
  func.func @_prenorm_mha_kernel(%arg0: i32, %arg1: memref<2x8x32xf32, #tpu.memory_space<vmem>>, %arg2: memref<5x32xf32, #tpu.memory_space<vmem>>, %arg3: memref<32x32xf32, #tpu.memory_space<vmem>>, %arg4: memref<32x32xf32, #tpu.memory_space<vmem>>, %arg5: memref<32x32xf32, #tpu.memory_space<vmem>>, %arg6: memref<2x8x32xf32, #tpu.memory_space<vmem>>) attributes {dimension_semantics = [#tpu.dimension_semantics<parallel>], iteration_bounds = array<i64: 2>, scalar_prefetch = 0 : i64, scratch_operands = 0 : i64, tpu.core_type = #tpu.core_type<tc>, window_params = [{transform_indices = @transform_0, window_bounds = array<i64: 2, 8, 32>}, {pipeline_mode = #tpu.pipeline_mode<synchronous>, transform_indices = @transform_1, window_bounds = array<i64: 5, 32>}, {pipeline_mode = #tpu.pipeline_mode<synchronous>, transform_indices = @transform_2, window_bounds = array<i64: 32, 32>}, {pipeline_mode = #tpu.pipeline_mode<synchronous>, transform_indices = @transform_3, window_bounds = array<i64: 32, 32>}, {pipeline_mode = #tpu.pipeline_mode<synchronous>, transform_indices = @transform_4, window_bounds = array<i64: 32, 32>}, {transform_indices = @transform_5, window_bounds = array<i64: 2, 8, 32>}]} {
    %c0 = arith.constant 0 : index
    %c0_0 = arith.constant 0 : index
    %c0_1 = arith.constant 0 : index
    %0 = vector.load %arg1[%c0, %c0_0, %c0_1] : memref<2x8x32xf32, #tpu.memory_space<vmem>>, vector<2x8x32xf32>
    %1 = vector.shape_cast %0 : vector<2x8x32xf32> to vector<16x32xf32>
    %c0_2 = arith.constant 0 : index
    %c0_3 = arith.constant 0 : index
    %2 = vector.load %arg2[%c0_2, %c0_3] : memref<5x32xf32, #tpu.memory_space<vmem>>, vector<5x32xf32>
    %3 = vector.extract_strided_slice %2 {offsets = [0, 0], sizes = [1, 32], strides = [1, 1]} : vector<5x32xf32> to vector<1x32xf32>
    %4 = vector.extract_strided_slice %2 {offsets = [1, 0], sizes = [1, 32], strides = [1, 1]} : vector<5x32xf32> to vector<1x32xf32>
    %5 = vector.extract_strided_slice %2 {offsets = [2, 0], sizes = [1, 32], strides = [1, 1]} : vector<5x32xf32> to vector<1x32xf32>
    %6 = vector.extract_strided_slice %2 {offsets = [3, 0], sizes = [1, 32], strides = [1, 1]} : vector<5x32xf32> to vector<1x32xf32>
    %7 = vector.extract_strided_slice %2 {offsets = [4, 0], sizes = [1, 32], strides = [1, 1]} : vector<5x32xf32> to vector<1x32xf32>
    %cst = arith.constant dense<0.000000e+00> : vector<16xf32>
    %8 = vector.multi_reduction <add>, %1, %cst [1] : vector<16x32xf32> to vector<16xf32>
    %9 = vector.shape_cast %8 : vector<16xf32> to vector<16x1xf32>
    %cst_4 = arith.constant 3.200000e+01 : f32
    %10 = vector.broadcast %cst_4 : f32 to vector<16x1xf32>
    %11 = arith.divf %9, %10 : vector<16x1xf32>
    %12 = vector.broadcast %11 : vector<16x1xf32> to vector<16x32xf32>
    %13 = arith.subf %1, %12 : vector<16x32xf32>
    %14 = arith.mulf %13, %13 : vector<16x32xf32>
    %cst_5 = arith.constant dense<0.000000e+00> : vector<16xf32>
    %15 = vector.multi_reduction <add>, %14, %cst_5 [1] : vector<16x32xf32> to vector<16xf32>
    %16 = vector.shape_cast %15 : vector<16xf32> to vector<16x1xf32>
    %cst_6 = arith.constant 3.200000e+01 : f32
    %17 = vector.broadcast %cst_6 : f32 to vector<16x1xf32>
    %18 = arith.divf %16, %17 : vector<16x1xf32>
    %cst_7 = arith.constant 9.99999974E-6 : f32
    %19 = vector.broadcast %cst_7 : f32 to vector<16x1xf32>
    %20 = arith.addf %18, %19 : vector<16x1xf32>
    %21 = math.rsqrt %20 : vector<16x1xf32>
    %22 = vector.broadcast %21 : vector<16x1xf32> to vector<16x32xf32>
    %23 = arith.mulf %13, %22 : vector<16x32xf32>
    %24 = vector.broadcast %3 : vector<1x32xf32> to vector<16x32xf32>
    %25 = arith.mulf %23, %24 : vector<16x32xf32>
    %26 = vector.broadcast %4 : vector<1x32xf32> to vector<16x32xf32>
    %27 = arith.addf %25, %26 : vector<16x32xf32>
    %c0_8 = arith.constant 0 : index
    %c0_9 = arith.constant 0 : index
    %28 = vector.load %arg3[%c0_8, %c0_9] : memref<32x32xf32, #tpu.memory_space<vmem>>, vector<32x32xf32>
    %cst_10 = arith.constant dense<0.000000e+00> : vector<16x32xf32>
    %29 = tpu.matmul %27, %28, %cst_10 {dimension_numbers = #tpu.dot_dimension_numbers<[1], [0], [0], [1], [0, 0, 1, 1], [], []>} : vector<16x32xf32>, vector<32x32xf32>, vector<16x32xf32> -> vector<16x32xf32>
    %30 = vector.broadcast %5 : vector<1x32xf32> to vector<16x32xf32>
    %31 = arith.addf %29, %30 : vector<16x32xf32>
    %c0_11 = arith.constant 0 : index
    %c0_12 = arith.constant 0 : index
    %32 = vector.load %arg4[%c0_11, %c0_12] : memref<32x32xf32, #tpu.memory_space<vmem>>, vector<32x32xf32>
    %cst_13 = arith.constant dense<0.000000e+00> : vector<16x32xf32>
    %33 = tpu.matmul %27, %32, %cst_13 {dimension_numbers = #tpu.dot_dimension_numbers<[1], [0], [0], [1], [0, 0, 1, 1], [], []>} : vector<16x32xf32>, vector<32x32xf32>, vector<16x32xf32> -> vector<16x32xf32>
    %34 = vector.broadcast %6 : vector<1x32xf32> to vector<16x32xf32>
    %35 = arith.addf %33, %34 : vector<16x32xf32>
    %c0_14 = arith.constant 0 : index
    %c0_15 = arith.constant 0 : index
    %36 = vector.load %arg5[%c0_14, %c0_15] : memref<32x32xf32, #tpu.memory_space<vmem>>, vector<32x32xf32>
    %cst_16 = arith.constant dense<0.000000e+00> : vector<16x32xf32>
    %37 = tpu.matmul %27, %36, %cst_16 {dimension_numbers = #tpu.dot_dimension_numbers<[1], [0], [0], [1], [0, 0, 1, 1], [], []>} : vector<16x32xf32>, vector<32x32xf32>, vector<16x32xf32> -> vector<16x32xf32>
    %38 = vector.broadcast %7 : vector<1x32xf32> to vector<16x32xf32>
    %39 = arith.addf %37, %38 : vector<16x32xf32>
    %cst_17 = arith.constant 0.353553385 : f32
    %40 = vector.broadcast %cst_17 : f32 to vector<16x32xf32>
    %41 = arith.mulf %31, %40 : vector<16x32xf32>
    %42 = vector.extract_strided_slice %41 {offsets = [0, 0], sizes = [8, 8], strides = [1, 1]} : vector<16x32xf32> to vector<8x8xf32>
    %43 = vector.extract_strided_slice %41 {offsets = [0, 8], sizes = [8, 8], strides = [1, 1]} : vector<16x32xf32> to vector<8x8xf32>
    %44 = vector.extract_strided_slice %41 {offsets = [0, 16], sizes = [8, 8], strides = [1, 1]} : vector<16x32xf32> to vector<8x8xf32>
    %45 = vector.extract_strided_slice %41 {offsets = [0, 24], sizes = [8, 8], strides = [1, 1]} : vector<16x32xf32> to vector<8x8xf32>
    %46 = vector.extract_strided_slice %41 {offsets = [8, 0], sizes = [8, 8], strides = [1, 1]} : vector<16x32xf32> to vector<8x8xf32>
    %47 = vector.extract_strided_slice %41 {offsets = [8, 8], sizes = [8, 8], strides = [1, 1]} : vector<16x32xf32> to vector<8x8xf32>
    %48 = vector.extract_strided_slice %41 {offsets = [8, 16], sizes = [8, 8], strides = [1, 1]} : vector<16x32xf32> to vector<8x8xf32>
    %49 = vector.extract_strided_slice %41 {offsets = [8, 24], sizes = [8, 8], strides = [1, 1]} : vector<16x32xf32> to vector<8x8xf32>
    %50 = vector.shape_cast %42 : vector<8x8xf32> to vector<1x8x8xf32>
    %51 = vector.shape_cast %43 : vector<8x8xf32> to vector<1x8x8xf32>
    %52 = vector.shape_cast %44 : vector<8x8xf32> to vector<1x8x8xf32>
    %53 = vector.shape_cast %45 : vector<8x8xf32> to vector<1x8x8xf32>
    %54 = vector.shape_cast %46 : vector<8x8xf32> to vector<1x8x8xf32>
    %55 = vector.shape_cast %47 : vector<8x8xf32> to vector<1x8x8xf32>
    %56 = vector.shape_cast %48 : vector<8x8xf32> to vector<1x8x8xf32>
    %57 = vector.shape_cast %49 : vector<8x8xf32> to vector<1x8x8xf32>
    %58 = tpu.concatenate %50, %51, %52, %53, %54, %55, %56, %57 in 0 : vector<1x8x8xf32>, vector<1x8x8xf32>, vector<1x8x8xf32>, vector<1x8x8xf32>, vector<1x8x8xf32>, vector<1x8x8xf32>, vector<1x8x8xf32>, vector<1x8x8xf32> -> vector<8x8x8xf32>
    %59 = vector.extract_strided_slice %35 {offsets = [0, 0], sizes = [8, 8], strides = [1, 1]} : vector<16x32xf32> to vector<8x8xf32>
    %60 = vector.extract_strided_slice %35 {offsets = [0, 8], sizes = [8, 8], strides = [1, 1]} : vector<16x32xf32> to vector<8x8xf32>
    %61 = vector.extract_strided_slice %35 {offsets = [0, 16], sizes = [8, 8], strides = [1, 1]} : vector<16x32xf32> to vector<8x8xf32>
    %62 = vector.extract_strided_slice %35 {offsets = [0, 24], sizes = [8, 8], strides = [1, 1]} : vector<16x32xf32> to vector<8x8xf32>
    %63 = vector.extract_strided_slice %35 {offsets = [8, 0], sizes = [8, 8], strides = [1, 1]} : vector<16x32xf32> to vector<8x8xf32>
    %64 = vector.extract_strided_slice %35 {offsets = [8, 8], sizes = [8, 8], strides = [1, 1]} : vector<16x32xf32> to vector<8x8xf32>
    %65 = vector.extract_strided_slice %35 {offsets = [8, 16], sizes = [8, 8], strides = [1, 1]} : vector<16x32xf32> to vector<8x8xf32>
    %66 = vector.extract_strided_slice %35 {offsets = [8, 24], sizes = [8, 8], strides = [1, 1]} : vector<16x32xf32> to vector<8x8xf32>
    %67 = vector.shape_cast %59 : vector<8x8xf32> to vector<1x8x8xf32>
    %68 = vector.shape_cast %60 : vector<8x8xf32> to vector<1x8x8xf32>
    %69 = vector.shape_cast %61 : vector<8x8xf32> to vector<1x8x8xf32>
    %70 = vector.shape_cast %62 : vector<8x8xf32> to vector<1x8x8xf32>
    %71 = vector.shape_cast %63 : vector<8x8xf32> to vector<1x8x8xf32>
    %72 = vector.shape_cast %64 : vector<8x8xf32> to vector<1x8x8xf32>
    %73 = vector.shape_cast %65 : vector<8x8xf32> to vector<1x8x8xf32>
    %74 = vector.shape_cast %66 : vector<8x8xf32> to vector<1x8x8xf32>
    %75 = tpu.concatenate %67, %68, %69, %70, %71, %72, %73, %74 in 0 : vector<1x8x8xf32>, vector<1x8x8xf32>, vector<1x8x8xf32>, vector<1x8x8xf32>, vector<1x8x8xf32>, vector<1x8x8xf32>, vector<1x8x8xf32>, vector<1x8x8xf32> -> vector<8x8x8xf32>
    %76 = vector.extract_strided_slice %39 {offsets = [0, 0], sizes = [8, 8], strides = [1, 1]} : vector<16x32xf32> to vector<8x8xf32>
    %77 = vector.extract_strided_slice %39 {offsets = [0, 8], sizes = [8, 8], strides = [1, 1]} : vector<16x32xf32> to vector<8x8xf32>
    %78 = vector.extract_strided_slice %39 {offsets = [0, 16], sizes = [8, 8], strides = [1, 1]} : vector<16x32xf32> to vector<8x8xf32>
    %79 = vector.extract_strided_slice %39 {offsets = [0, 24], sizes = [8, 8], strides = [1, 1]} : vector<16x32xf32> to vector<8x8xf32>
    %80 = vector.extract_strided_slice %39 {offsets = [8, 0], sizes = [8, 8], strides = [1, 1]} : vector<16x32xf32> to vector<8x8xf32>
    %81 = vector.extract_strided_slice %39 {offsets = [8, 8], sizes = [8, 8], strides = [1, 1]} : vector<16x32xf32> to vector<8x8xf32>
    %82 = vector.extract_strided_slice %39 {offsets = [8, 16], sizes = [8, 8], strides = [1, 1]} : vector<16x32xf32> to vector<8x8xf32>
    %83 = vector.extract_strided_slice %39 {offsets = [8, 24], sizes = [8, 8], strides = [1, 1]} : vector<16x32xf32> to vector<8x8xf32>
    %84 = vector.shape_cast %76 : vector<8x8xf32> to vector<1x8x8xf32>
    %85 = vector.shape_cast %77 : vector<8x8xf32> to vector<1x8x8xf32>
    %86 = vector.shape_cast %78 : vector<8x8xf32> to vector<1x8x8xf32>
    %87 = vector.shape_cast %79 : vector<8x8xf32> to vector<1x8x8xf32>
    %88 = vector.shape_cast %80 : vector<8x8xf32> to vector<1x8x8xf32>
    %89 = vector.shape_cast %81 : vector<8x8xf32> to vector<1x8x8xf32>
    %90 = vector.shape_cast %82 : vector<8x8xf32> to vector<1x8x8xf32>
    %91 = vector.shape_cast %83 : vector<8x8xf32> to vector<1x8x8xf32>
    %92 = tpu.concatenate %84, %85, %86, %87, %88, %89, %90, %91 in 0 : vector<1x8x8xf32>, vector<1x8x8xf32>, vector<1x8x8xf32>, vector<1x8x8xf32>, vector<1x8x8xf32>, vector<1x8x8xf32>, vector<1x8x8xf32>, vector<1x8x8xf32> -> vector<8x8x8xf32>
    "tpu.trace_start"() <{level = 10 : i32, message = "bqd,bkd->bqk"}> : () -> ()
    %cst_18 = arith.constant dense<0.000000e+00> : vector<8x8x8xf32>
    %93 = tpu.matmul %58, %75, %cst_18 {dimension_numbers = #tpu.dot_dimension_numbers<[2], [2], [1], [1], [0, 0, 0, 1, 1, 1], [0], [0]>} : vector<8x8x8xf32>, vector<8x8x8xf32>, vector<8x8x8xf32> -> vector<8x8x8xf32>
    "tpu.trace_stop"() : () -> ()
    %cst_19 = arith.constant dense<0xFF800000> : vector<8x8xf32>
    %94 = vector.multi_reduction <maximumf>, %93, %cst_19 [2] : vector<8x8x8xf32> to vector<8x8xf32>
    %95 = vector.shape_cast %94 : vector<8x8xf32> to vector<8x8x1xf32>
    %96 = vector.broadcast %95 : vector<8x8x1xf32> to vector<8x8x8xf32>
    %97 = arith.subf %93, %96 : vector<8x8x8xf32>
    %98 = math.exp %97 : vector<8x8x8xf32>
    %cst_20 = arith.constant dense<0.000000e+00> : vector<8x8xf32>
    %99 = vector.multi_reduction <add>, %98, %cst_20 [2] : vector<8x8x8xf32> to vector<8x8xf32>
    %100 = vector.shape_cast %99 : vector<8x8xf32> to vector<8x8x1xf32>
    %101 = tpu.reciprocal %100 {approx = true} : vector<8x8x1xf32> -> vector<8x8x1xf32>
    %102 = arith.mulf %100, %101 : vector<8x8x1xf32>
    %cst_21 = arith.constant 2.000000e+00 : f32
    %103 = vector.broadcast %cst_21 : f32 to vector<8x8x1xf32>
    %104 = arith.subf %103, %102 : vector<8x8x1xf32>
    %105 = arith.mulf %101, %104 : vector<8x8x1xf32>
    %106 = vector.broadcast %105 : vector<8x8x1xf32> to vector<8x8x8xf32>
    %107 = arith.mulf %98, %106 : vector<8x8x8xf32>
    "tpu.trace_start"() <{level = 10 : i32, message = "bqk,bkd->bqd"}> : () -> ()
    %cst_22 = arith.constant dense<0.000000e+00> : vector<8x8x8xf32>
    %108 = tpu.matmul %107, %92, %cst_22 {dimension_numbers = #tpu.dot_dimension_numbers<[2], [1], [1], [2], [0, 0, 0, 1, 1, 2], [0], [0]>} : vector<8x8x8xf32>, vector<8x8x8xf32>, vector<8x8x8xf32> -> vector<8x8x8xf32>
    "tpu.trace_stop"() : () -> ()
    %109 = vector.extract_strided_slice %108 {offsets = [0, 0, 0], sizes = [1, 8, 8], strides = [1, 1, 1]} : vector<8x8x8xf32> to vector<1x8x8xf32>
    %110 = vector.shape_cast %109 : vector<1x8x8xf32> to vector<8x8xf32>
    %111 = vector.extract_strided_slice %108 {offsets = [1, 0, 0], sizes = [1, 8, 8], strides = [1, 1, 1]} : vector<8x8x8xf32> to vector<1x8x8xf32>
    %112 = vector.shape_cast %111 : vector<1x8x8xf32> to vector<8x8xf32>
    %113 = vector.extract_strided_slice %108 {offsets = [2, 0, 0], sizes = [1, 8, 8], strides = [1, 1, 1]} : vector<8x8x8xf32> to vector<1x8x8xf32>
    %114 = vector.shape_cast %113 : vector<1x8x8xf32> to vector<8x8xf32>
    %115 = vector.extract_strided_slice %108 {offsets = [3, 0, 0], sizes = [1, 8, 8], strides = [1, 1, 1]} : vector<8x8x8xf32> to vector<1x8x8xf32>
    %116 = vector.shape_cast %115 : vector<1x8x8xf32> to vector<8x8xf32>
    %117 = tpu.concatenate %110, %112, %114, %116 in 1 : vector<8x8xf32>, vector<8x8xf32>, vector<8x8xf32>, vector<8x8xf32> -> vector<8x32xf32>
    %118 = vector.extract_strided_slice %108 {offsets = [4, 0, 0], sizes = [1, 8, 8], strides = [1, 1, 1]} : vector<8x8x8xf32> to vector<1x8x8xf32>
    %119 = vector.shape_cast %118 : vector<1x8x8xf32> to vector<8x8xf32>
    %120 = vector.extract_strided_slice %108 {offsets = [5, 0, 0], sizes = [1, 8, 8], strides = [1, 1, 1]} : vector<8x8x8xf32> to vector<1x8x8xf32>
    %121 = vector.shape_cast %120 : vector<1x8x8xf32> to vector<8x8xf32>
    %122 = vector.extract_strided_slice %108 {offsets = [6, 0, 0], sizes = [1, 8, 8], strides = [1, 1, 1]} : vector<8x8x8xf32> to vector<1x8x8xf32>
    %123 = vector.shape_cast %122 : vector<1x8x8xf32> to vector<8x8xf32>
    %124 = vector.extract_strided_slice %108 {offsets = [7, 0, 0], sizes = [1, 8, 8], strides = [1, 1, 1]} : vector<8x8x8xf32> to vector<1x8x8xf32>
    %125 = vector.shape_cast %124 : vector<1x8x8xf32> to vector<8x8xf32>
    %126 = tpu.concatenate %119, %121, %123, %125 in 1 : vector<8x8xf32>, vector<8x8xf32>, vector<8x8xf32>, vector<8x8xf32> -> vector<8x32xf32>
    %127 = vector.shape_cast %117 : vector<8x32xf32> to vector<1x8x32xf32>
    %128 = vector.shape_cast %126 : vector<8x32xf32> to vector<1x8x32xf32>
    %129 = tpu.concatenate %127, %128 in 0 : vector<1x8x32xf32>, vector<1x8x32xf32> -> vector<2x8x32xf32>
    %c0_23 = arith.constant 0 : index
    %c0_24 = arith.constant 0 : index
    %c0_25 = arith.constant 0 : index
    %130 = vector.load %arg6[%c0_23, %c0_24, %c0_25] : memref<2x8x32xf32, #tpu.memory_space<vmem>>, vector<2x8x32xf32>
    tpu.vector_store %arg6[%c0_23, %c0_24, %c0_25], %129 {strides = array<i32>} : memref<2x8x32xf32, #tpu.memory_space<vmem>>, vector<2x8x32xf32>,
    return
  }
  func.func @transform_0(%arg0: i32) -> (i32, i32, i32) {
    %c0_i32 = arith.constant 0 : i32
    %c0_i32_0 = arith.constant 0 : i32
    %c0_i32_1 = arith.constant 0 : i32
    return %arg0, %c0_i32, %c0_i32_0 : i32, i32, i32
  }
  func.func @transform_1(%arg0: i32) -> (i32, i32) {
    %c0_i32 = arith.constant 0 : i32
    %c0_i32_0 = arith.constant 0 : i32
    %c0_i32_1 = arith.constant 0 : i32
    return %c0_i32, %c0_i32_0 : i32, i32
  }
  func.func @transform_2(%arg0: i32) -> (i32, i32) {
    %c0_i32 = arith.constant 0 : i32
    %c0_i32_0 = arith.constant 0 : i32
    %c0_i32_1 = arith.constant 0 : i32
    return %c0_i32, %c0_i32_0 : i32, i32
  }
  func.func @transform_3(%arg0: i32) -> (i32, i32) {
    %c0_i32 = arith.constant 0 : i32
    %c0_i32_0 = arith.constant 0 : i32
    %c0_i32_1 = arith.constant 0 : i32
    return %c0_i32, %c0_i32_0 : i32, i32
  }
  func.func @transform_4(%arg0: i32) -> (i32, i32) {
    %c0_i32 = arith.constant 0 : i32
    %c0_i32_0 = arith.constant 0 : i32
    %c0_i32_1 = arith.constant 0 : i32
    return %c0_i32, %c0_i32_0 : i32, i32
  }
  func.func @transform_5(%arg0: i32) -> (i32, i32, i32) {
    %c0_i32 = arith.constant 0 : i32
    %c0_i32_0 = arith.constant 0 : i32
    %c0_i32_1 = arith.constant 0 : i32
    return %arg0, %c0_i32, %c0_i32_0 : i32, i32, i32
  }
}

</mosaic_0001>

<bundles_post_ra>
// kernel: tpu_custom_call.1
= control target key start
LH: loop header
LB: loop body
LE: loop exit
PB: predicated region body
PF: predicated region fallthrough
CT: control target
= control target key end

     0   :  { %10 = vsyncpa [#allocation3], 0  ;;  %s3094_s0 = inlined_call_operand.hbm [shape: f32[4,8,32], index: 0, kind: input, shape index: {}]   ;;  %s3095_s1 = inlined_call_operand.hbm [shape: f32[5,32], index: 1, kind: input, shape index: {}]   ;;  %s3096_s2 = inlined_call_operand.hbm [shape: f32[32,32], index: 2, kind: input, shape index: {}]   ;;  %s3097_s3 = inlined_call_operand.hbm [shape: f32[32,32], index: 3, kind: input, shape index: {}]   ;;  %s3098_s4 = inlined_call_operand.hbm [shape: f32[32,32], index: 4, kind: input, shape index: {}]   ;;  %s3099_s5 = inlined_call_operand.hbm [shape: f32[4,8,32], index: 5, kind: output, shape index: {}]  }
   0x1   :  { %12 = vsyncpa [#allocation3 + $0x1], 0 }
   0x2   :  { %13 = vsyncpa [#allocation6], 0 }
   0x3   :  { %14 = vsyncpa [#allocation9], 0 }
   0x4   :  { %15 = vsyncpa [#allocation4], 0 }
   0x5   :  { %17 = vsyncpa [#allocation4 + $0x1], 0  ;;  %s2701_s18 = smov 0   ;;  %s2703_s19 = smov 0  }
   0x6   :  { %s2705_s20 = smov 0   ;;  %s2707_s21 = smov 0  }
   0x7 LB: > { %s2722_s22 = sadd.s32 4294967295, %s2652_s21   ;;  %s2097_s23 = sadd.s32 4294967294, %s2652_s21   ;;  %s2652_s21 = sphi %s2707_s21, %s3125_s21   ;;  %s2648_s20 = sphi %s2705_s20, %s3124_s20   ;;  %s2644_s19 = sphi %s2703_s19, %s3123_s19   ;;  %s2640_s18 = sphi %s2701_s18, %s3122_s18  }
   0x8   : > { %p43_p0 = scmp.ne.s32.totalorder %s2644_s19, %s2640_s18  ;;  %p3100_p1 = scmp.eq.s32.totalorder %s2722_s22, 0 }
   0x9   : > { %p157_p3 = scmp.eq.s32.totalorder %s2097_s23, 1  ;;  %p2098_p5 = scmp.ge.s32.totalorder %s2652_s21, 1 }
   0xa   : > { %p2731_p4 = por %p3100_p1, %p43_p0  ;;  %p164_p7 = scmp.lt.s32.totalorder %s2652_s21, 3 }
   0xb   : > { %p2736_p6 = por %p157_p3, %p43_p0  ;;  %s2654_s27 = smov [#allocation5]  }
   0xc   : > { %s3105_s24 = scalar_select %p2731_p4, 1, 0 }
   0xd   : > { %s3106_s25 = scalar_select %p2736_p6, 1, 0 }
   0xe   : > { %p2741_p8 = pnand %p2098_p5, %p164_p7  ;;  %s177_s28 = sshll.u32 %s2654_s27, 4  ;;  %s178_s28 = int_to_ptr.vmem [resolvable:$true] %s177_s28 }
   0xf   : > { %s2655_s30 = smov [#allocation8]   ;;  %s2656_s7 = smov [#allocation7]  }
  0x10   : > { %s3107_s26 = scalar_select %p2741_p8, 1, 0 }
  0x11   : > { %p2334_p10 = pneg %p2741_p8  ;;  %s200_s6 = sshll.u32 %s2655_s30, 4  ;;  %s201_s6 = int_to_ptr.vmem [resolvable:$true] %s200_s6 }
  0x12   : > { %s187_s8 = sshll.u32 %s2656_s7, 4  ;;  %s2459_s9 = scalar_lea.vmem %s178_s28, 128  ;;  %s188_s8 = int_to_ptr.vmem [resolvable:$true] %s187_s8 }
  0x13   : > { %p2750_p11 = pnand %p2334_p10, %p3100_p1  ;;  %p2460_p13 = scmp.ne.s32.totalorder %s178_s28, %s2459_s9 }
  0x14   : > { %p2467_p5 = scmp.lt.s32.totalorder %s178_s28, %s178_s28  ;;  %p2468_p7 = scmp.lt.s32.totalorder %s2459_s9, %s2459_s9 }
  0x15   : > { %p2450_p12 = pneg %p2750_p11 }
  0x16   : > { %p2469_p10 = por %p2468_p7, %p2467_p5 }
  0x17   : > { %p2462_p0 = pnand %p2460_p13, %p2450_p12 }
  0x19   : > { %p2463_p3 = pneg %p2462_p0 }
  0x1b   : > { %p2470_p9 = pnand %p2469_p10, %p2463_p3 }
  0x1d   : > { %2473 = shalt.err (!%p2470_p9)
}
  0x1e   : > { %2337 = dma.hbm_to_vmem [thread:$0]  (!%p2750_p11), %s3095_s1, 128, %s178_s28, [#allocation6]  }
  0x1f   : > { %s2485_s12 = scalar_lea.vmem %s201_s6, 512  ;;  %p2493_p13 = scmp.lt.s32.totalorder %s201_s6, %s201_s6 }
  0x20   : > { %p2486_p1 = scmp.ne.s32.totalorder %s201_s6, %s2485_s12  ;;  %p2494_p0 = scmp.lt.s32.totalorder %s2485_s12, %s2485_s12 }
  0x22   : > { %p2488_p2 = pnand %p2486_p1, %p2450_p12  ;;  %p2495_p4 = por %p2494_p0, %p2493_p13 }
  0x24   : > { %p2489_p6 = pneg %p2488_p2 }
  0x26   : > { %p2496_p8 = pnand %p2495_p4, %p2489_p6 }
  0x28   : > { %2499 = shalt.err (!%p2496_p8)
}
  0x29   : > { %s3103_s13 = smov 128   ;;  %s2658_s14 = smov 8  }
  0x2a   : > { %2343 = dma.hbm_to_vmem [thread:$0]  (!%p2750_p11), %s3097_s3, 512, %s201_s6, [#allocation9], %s3103_s13, %s3103_s13, %s2658_s14  }
  0x2b   : > { %s2511_s17 = scalar_lea.vmem %s188_s8, 512  ;;  %p2519_p6 = scmp.lt.s32.totalorder %s188_s8, %s188_s8 }
  0x2c   : > { %p2512_p1 = scmp.ne.s32.totalorder %s188_s8, %s2511_s17  ;;  %p2520_p8 = scmp.lt.s32.totalorder %s2511_s17, %s2511_s17 }
  0x2e   : > { %p2514_p2 = pnand %p2512_p1, %p2450_p12  ;;  %p2521_p9 = por %p2520_p8, %p2519_p6 }
  0x30   : > { %p2515_p4 = pneg %p2514_p2 }
  0x32   : > { %p2522_p3 = pnand %p2521_p9, %p2515_p4 }
  0x34   : > { %2525 = shalt.err (!%p2522_p3)
}
  0x35   : > { %2340 = dma.hbm_to_vmem [thread:$0]  (!%p2750_p11), %s3096_s2, 512, %s188_s8, [#allocation6], %s3103_s13, %s3103_s13, %s2658_s14  }
  0x36   : > { %s2659_s28 = smov [#allocation10]  }
  0x37   : > { %s213_s30 = sshll.u32 %s2659_s28, 4  ;;  %s214_s30 = int_to_ptr.vmem [resolvable:$true] %s213_s30 }
  0x38   : > { %s2537_s6 = scalar_lea.vmem %s214_s30, 512  ;;  %p2545_p13 = scmp.lt.s32.totalorder %s214_s30, %s214_s30 }
  0x39   : > { %p2538_p5 = scmp.ne.s32.totalorder %s214_s30, %s2537_s6  ;;  %p2546_p0 = scmp.lt.s32.totalorder %s2537_s6, %s2537_s6 }
  0x3b   : > { %p2540_p7 = pnand %p2538_p5, %p2450_p12  ;;  %p2547_p1 = por %p2546_p0, %p2545_p13 }
  0x3d   : > { %p2541_p10 = pneg %p2540_p7 }
  0x3f   : > { %p2548_p2 = pnand %p2547_p1, %p2541_p10 }
  0x41   : > { %2551 = shalt.err (!%p2548_p2)
}
  0x42   : > { %2346 = dma.hbm_to_vmem [thread:$0]  (!%p2750_p11), %s3098_s4, 512, %s214_s30, [#allocation9], %s3103_s13, %s3103_s13, %s2658_s14  }
  0x43   : > { %s2798_s9 = sadd.s32 1, %s2652_s21   ;;  %s30_s29 = sadd.s32 1, %s2648_s20 }
  0x44   : > { %s27_s10 = ssub.s32 %s2652_s21, %s2798_s9  ;;  %p37_p12 = scmp.ne.s32.totalorder %s2648_s20, %s2644_s19 }
  0x45   : > { %p28_p4 = scmp.eq.s32.totalorder %s27_s10, 0  ;;  %p38_p6 = scmp.eq.s32.totalorder %s2652_s21, 0 }
  0x46   : > { %p3109_p8 = scmp.eq.s32.totalorder %s2722_s22, 1  ;;  %p2359_p3 = scmp.lt.s32.totalorder %s2652_s21, 2 }
  0x47   : > { %s2814_s12 = scalar_select %p28_p4, %s2648_s20, %s30_s29  }
  0x48   : > { %p2808_p9 = por %p3109_p8, %p37_p12  ;;  %p39_p5 = por %p38_p6, %p37_p12 }
  0x49   : > { %s227_s15 = sand.u32 1, %s2648_s20   ;;  %s2149_s17 = sshll.u32 %s2652_s21, 8 }
  0x4a   : > { %s3110_s11 = scalar_select %p2808_p9, 1, 0 }
  0x4b   : > { %s2104_s16 = sshll.u32 %s227_s15, 4  ;;  %s2821_s28 = scalar_lea.hbm %s3094_s0, %s2149_s17 }
  0x4c   : > { %s231_s30 = scalar_lea.vmem [#allocation2], %s2104_s16  ;;  %p2825_p11 = pnand %p2359_p3, %p39_p5 }
  0x4d   : > { %s238_s6 = sshll.u32 %s231_s30, 4  ;;  %s2829_s8 = scalar_lea.sflag [#allocation3], %s227_s15  ;;  %s2823_s6 = int_to_ptr.vmem [resolvable:$true] %s238_s6 }
  0x4e   : > { %s2552_s29 = scalar_lea.hbm %s2821_s28, 256  ;;  %p2554_p10 = pneg %p2825_p11 }
  0x4f   : > { %p2553_p7 = scmp.ne.s32.totalorder %s2821_s28, %s2552_s29  ;;  %s2557_s16 = scalar_lea.hbm %s3094_s0, 512 }
  0x50   : > { %p2558_p1 = scmp.lt.s32.totalorder %s2821_s28, %s3094_s0  ;;  %p2559_p2 = scmp.lt.s32.totalorder %s2557_s16, %s2552_s29 }
  0x51   : > { %p2555_p13 = pnand %p2554_p10, %p2553_p7 }
  0x52   : > { %p2560_p12 = por %p2559_p2, %p2558_p1 }
  0x53   : > { %p2556_p0 = pneg %p2555_p13 }
  0x55   : > { %p2561_p4 = pnand %p2560_p12, %p2556_p0 }
  0x57   : > { %2564 = shalt.err (!%p2561_p4)
}
  0x58   : > { %s2565_s15 = scalar_lea.vmem %s2823_s6, 256  ;;  %s2660_s30 = smov [#allocation2]  }
  0x59   : > { %p2566_p6 = scmp.ne.s32.totalorder %s2823_s6, %s2565_s15  ;;  %s2570_s13 = sshll.u32 %s2660_s30, 4  ;;  %s2571_s13 = int_to_ptr.vmem [resolvable:$false] %s2570_s13 }
  0x5a   : > { %s2572_s10 = scalar_lea.vmem %s2571_s13, 512  ;;  %p2573_p5 = scmp.lt.s32.totalorder %s2823_s6, %s2571_s13 }
  0x5b   : > { %p2568_p8 = pnand %p2566_p6, %p2554_p10  ;;  %p2574_p7 = scmp.lt.s32.totalorder %s2572_s10, %s2565_s15 }
  0x5d   : > { %p2569_p3 = pneg %p2568_p8  ;;  %p2575_p13 = por %p2574_p7, %p2573_p5 }
  0x5f   : > { %p2576_p9 = pnand %p2575_p13, %p2569_p3 }
  0x61   : > { %2579 = shalt.err (!%p2576_p9)
}
  0x62   : > { %s3112_s29 = smov 128   ;;  %p3113_p10 = scmp.ne.s32.totalorder %s3107_s26, 0 }
  0x63   : > { %2350 = dma.hbm_to_vmem [thread:$0]  (!%p2825_p11), %s2821_s28, 256, %s2823_s6, %s2829_s8, %s3112_s29, %s3112_s29, %s2658_s14  }
  0x64   : > { %250 = sbr.rel (%p3113_p10) target bundleno = 1654 (0x676), region = 40  ;;  %s2856_s17 = sand.u32 (!%p3113_p10), 1, %s2644_s19  }
  0x65   : > { %s2108_s13 = sshll.u32 (!%p3113_p10), %s2856_s17, 4  ;;  %s253_s16 = scalar_lea.sflag (!%p3113_p10), [#allocation3], %s2856_s17 }
  0x66   : > { %s256_s7 = scalar_lea.vmem (!%p3113_p10), [#allocation2], %s2108_s13  ;;  %p3114_p9 = scmp.ne.s32.totalorder (!%p3113_p10), %s3105_s24, 0 }
  0x69   : > { %2623 = dma.done.wait (%p3114_p9), %s253_s16, 256  }
  0x6a   : > { %2625 = vsyncadd (%p3114_p9), %s253_s16, 4294967040  ;;  %p3115_p11 = scmp.eq.s32.totalorder %s2722_s22, 0 }
  0x6c   : > { %2627 = dma.done.wait (%p3115_p11), [#allocation6], 640   ;;  %p3116_p0 = pmov %p3115_p11 }
  0x6e   : > { %2629 = vsyncadd (%p3116_p0), [#allocation6], 4294966656  ;;  %p3117_p1 = pmov %p3116_p0 }
  0x6f   : > { %p3118_p2 = pmov %p3116_p0 }
  0x70   : > { %2631 = dma.done.wait (%p3117_p1), [#allocation9], 1024  }
  0x71   : > { %2633 = vsyncadd (%p3118_p2), [#allocation9], 4294966272  ;;  %vm304_vm0 = vcmask 261120   ;;  %v301_v0 = vld [vmem:[%s256_s7] sm:$0xff]  ;;  %v302_v1 = vld [vmem:[%s256_s7 + $0x8] sm:$0xff]  ;;  %v332_v28 = vlaneseq  ;;  %v2661_v47 = vmov 0.0  }
  0x72   : > { %v305_v2 = vsel %vm304_vm0, %v301_v0, 0.0  ;;  %v308_v3 = vsel %vm304_vm0, %v302_v1, 0.0  ;;  %v347_v14 = vld [vmem:[#allocation7 + $0x18] sm:$0xff]  ;;  %v346_v16 = vld [vmem:[#allocation7 + $0x10] sm:$0xff]  ;;  %v345_v18 = vld [vmem:[#allocation7 + $0x8] sm:$0xff]  ;;  %vm2662_vm1 = vmmov 0  }
  0x73   : > { %306 = vadd.xlane.f32.xlu0 %v305_v2  ;;  %v436_v15 = vld [vmem:[#allocation8 + $0x18] sm:$0xff]  ;;  %2201 = vmatprep.subr.mxu0 %v347_v14  ;;  %v435_v17 = vld [vmem:[#allocation8 + $0x10] sm:$0xff]  ;;  %v434_v19 = vld [vmem:[#allocation8 + $0x8] sm:$0xff]  ;;  %v333_v30 = vshrl.u32 %v332_v28, 7  ;;  %vm649_vm2 = vcmask 64512   ;;  %s2663_s24 = smov 112  }
  0x74   : > { %2212 = vmatprep.subr.mxu1 %v436_v15  ;;  %2202 = vmatpush3.msra.mxu0 %v347_v14  ;;  %v344_v20 = vld [vmem:[#allocation7] sm:$0xff]  ;;  %v519_v22 = vld [vmem:[#allocation10 + $0x18] sm:$0xff]  ;;  %v518_v44 = vld [vmem:[#allocation10 + $0x10] sm:$0xff]  ;;  %s2664_s26 = smov 120   ;;  %s2665_s14 = smov 104   ;;  %vm1951_vm3 = vcmask 130048  }
  0x75   : > { %2213 = vmatpush3.msra.mxu1 %v436_v15  ;;  %2203 = vmatprep.subr.mxu0 %v346_v16  ;;  %v433_v21 = vld [vmem:[#allocation8] sm:$0xff]  ;;  %v334_v31 = vsub.s32 0, %v333_v30  ;;  %v303_v32 = vld [vmem:[#allocation5] sm:$0x1f]  ;;  %v340_v33 = vsub.s32 1, %v333_v30  ;;  %v517_v45 = vld [vmem:[#allocation10 + $0x8] sm:$0xff] }
  0x76   : > { %2214 = vmatprep.subr.mxu1 %v435_v17  ;;  %2204 = vmatpush3.msra.mxu0 %v346_v16  ;;  %v516_v46 = vld [vmem:[#allocation10] sm:$0xff]  ;;  %v350_v48 = vsub.s32 2, %v333_v30  ;;  %v439_v49 = vsub.s32 3, %v333_v30  ;;  %v522_v54 = vsub.s32 4, %v333_v30  ;;  %s2666_s28 = smov 8   ;;  %s2667_s6 = smov 16  }
  0x77   : > { %309 = vadd.xlane.f32.xlu0 %v308_v3  ;;  %2215 = vmatpush3.msra.mxu1 %v435_v17  ;;  %v335_v34 = vrot.slane %v303_v32, %v334_v31  ;;  %v341_v37 = vrot.slane %v303_v32, %v340_v33  ;;  %s2668_s8 = smov 24   ;;  %vm1953_vm4 = vcmask 195584   ;;  %s298_s23 = scalar_lea.vmem [#allocation11], %s2108_s13 }
  0x78   : > { %2205 = vmatprep.subr.mxu0 %v345_v18  ;;  %2216 = vmatprep.subr.mxu1 %v434_v19  ;;  %v351_v52 = vrot.slane %v303_v32, %v350_v48  ;;  %v440_v53 = vrot.slane %v303_v32, %v439_v49  ;;  %v523_v60 = vrot.slane %v303_v32, %v522_v54  ;;  %s1986_s27 = sshll.u32 %s298_s23, 4  ;;  %s2150_s15 = sshll.u32 %s2722_s22, 8  ;;  %s3042_s27 = int_to_ptr.vmem [resolvable:$true] %s1986_s27 }
  0x79   : > { %2206 = vmatpush3.msra.mxu0 %v345_v18  ;;  %2217 = vmatpush3.msra.mxu1 %v434_v19  ;;  %s3048_s29 = scalar_lea.hbm %s3099_s5, %s2150_s15  ;;  %s1973_s13 = scalar_lea.sflag [#allocation4], %s2856_s17 }
  0x7a   : > { %2207 = vmatprep.subr.mxu0 %v344_v20  ;;  %2218 = vmatprep.subr.mxu1 %v433_v21  ;;  %s2580_s22 = scalar_lea.vmem %s3042_s27, 256  ;;  %p3119_p4 = scmp.ne.s32.totalorder %s3110_s11, 0 }
  0x7b   : > { %2208 = vmatpush3.msra.mxu0 %v344_v20  ;;  %2219 = vmatpush3.msra.mxu1 %v433_v21  ;;  %p2581_p12 = scmp.ne.s32.totalorder %s3042_s27, %s2580_s22  ;;  %s2669_s16 = smov [#allocation11]  }
  0x7c   : > { %2223 = vmatprep.subr.mxu0 %v519_v22  ;;  %2234 = vmatprep.subr.mxu1 %v2661_v47  ;;  %s2584_s7 = sshll.u32 %s2669_s16, 4  ;;  %s2585_s7 = int_to_ptr.vmem [resolvable:$false] %s2584_s7 }
  0x7d   : > { %p2582_p6 = pnand %p2581_p12, %p3119_p4  ;;  %p2587_p3 = scmp.lt.s32.totalorder %s3042_s27, %s2585_s7 }
  0x7f   : > { %p2583_p8 = pneg %p2582_p6 }
  0xfc   : > { %v307_v4 = vpop.xlane.xlu0 %306 }
  0xfd   : > { %v312_v5 = vmul.f32 0.03125, %v307_v4 }
  0xff   : > { %v314_v6 = vsub.f32 %v301_v0, %v312_v5 }
 0x100   : > { %v310_v7 = vpop.xlane.xlu0 %309 }
 0x101   : > { %v313_v8 = vmul.f32 0.03125, %v310_v7  ;;  %v316_v9 = vmul.f32 %v314_v6, %v314_v6 }
 0x103   : > { %v315_v10 = vsub.f32 %v302_v1, %v313_v8  ;;  %v318_v11 = vsel %vm304_vm0, %v316_v9, 0.0 }
 0x104   : > { %319 = vadd.xlane.f32.xlu1 %v318_v11 }
 0x105   : > { %v317_v12 = vmul.f32 %v315_v10, %v315_v10 }
 0x107   : > { %v321_v13 = vsel %vm304_vm0, %v317_v12, 0.0 }
 0x108   : > { %322 = vadd.xlane.f32.xlu1 %v321_v13 }
 0x18d   : > { %v320_v23 = vpop.xlane.xlu1 %319 }
 0x18e   : > { %v324_v24 = vmul.f32 0.03125, %v320_v23 }
 0x190   : > { %v326_v25 = vadd.f32 1e-05, %v324_v24 }
 0x191   : > { %v323_v26 = vpop.xlane.xlu1 %322 }
 0x192   : > { %2412 = vrsqrt.f32 %v326_v25  ;;  %v325_v27 = vmul.f32 0.03125, %v323_v26 }
 0x194   : > { %v327_v29 = vadd.f32 1e-05, %v325_v27 }
 0x196   : > { %2414 = vrsqrt.f32 %v327_v29 }
 0x19f   : > { %v2413_v35 = vpop.eup %2412 }
 0x1a0   : > { %v330_v36 = vmul.f32 %v2413_v35, %v314_v6 }
 0x1a2   : > { %v336_v38 = vmul.f32 %v335_v34, %v330_v36 }
 0x1a3   : > { %v2415_v39 = vpop.eup %2414 }
 0x1a4   : > { %v342_v40 = vadd.f32 %v341_v37, %v336_v38  ;;  %v331_v41 = vmul.f32 %v2415_v39, %v315_v10 }
 0x1a6   : > { %2209 = vmatprep.mubr.msk.f32.mxu0 %vm304_vm0, %v342_v40  ;;  %2220 = vmatprep.mubr.msk.f32.mxu1 %vm304_vm0, %v342_v40  ;;  %v337_v42 = vmul.f32 %v335_v34, %v331_v41 }
 0x1a8   : > { %v343_v43 = vadd.f32 %v341_v37, %v337_v42 }
 0x1aa   : > { %2210 = vmatmul.mubr.msk.f32.vlgmr.msra.gmra.mxu0 %vm304_vm0, %v343_v43  ;;  %2221 = vmatmul.mubr.msk.f32.vlgmr.msra.gmra.mxu1 %vm304_vm0, %v343_v43 }
 0x1ab   : > { %2224 = vmatpush3.msra.mxu0 %v519_v22  ;;  %2231 = vmatprep.mubr.msk.f32.mxu0 %vm304_vm0, %v342_v40 }
 0x1ac   : > { %2225 = vmatprep.subr.mxu0 %v518_v44  ;;  %2236 = vmatprep.mubr.msk.f32.mxu1 %vm2662_vm1, %v2661_v47 }
 0x1ad   : > { %2226 = vmatpush3.msra.mxu0 %v518_v44 }
 0x1ae   : > { %2227 = vmatprep.subr.mxu0 %v517_v45 }
 0x1af   : > { %2228 = vmatpush3.msra.mxu0 %v517_v45 }
 0x1b0   : > { %2229 = vmatprep.subr.mxu0 %v516_v46 }
 0x1b1   : > { %2230 = vmatpush3.msra.mxu0 %v516_v46 }
 0x1b2   : > { %2232 = vmatmul.mubr.msk.f32.vlgmr.msra.gmra.mxu0 %vm304_vm0, %v343_v43  ;;  %2244 = vmatprep.subr.mxu0 %v2661_v47 }
 0x1b3   : > { %2246 = vmatprep.mubr.msk.f32.mxu0 %vm2662_vm1, %v2661_v47 }
 0x26a   : > { %v2211_v50 = vpop.f32.mrf.mxu0  ;;  %v2222_v51 = vpop.f32.mrf.mxu1 }
 0x26b   : > { %v430_v61 = vadd.f32 %v2211_v50, %v351_v52  ;;  %v513_v62 = vadd.f32 %v2222_v51, %v440_v53 }
 0x26c   : > { %v424_v55 = vpop.f32.mrf.mxu0  ;;  %v507_v56 = vpop.f32.mrf.mxu1 }
 0x26d   : > { %v425_v57 = vadd.f32 %v424_v55, %v351_v52  ;;  %v508_v58 = vadd.f32 %v507_v56, %v440_v53  ;;  %v600_v1 = vmul.f32 0.35355338, %v430_v61 }
 0x26f   : > { %v599_v59 = vmul.f32 0.35355338, %v425_v57  ;;  %618 = vrot.lane.b32.xlu1 %v508_v58, %s2663_s24  ;;  %616 = vrot.lane.b32.xlu0 %v508_v58, %s2664_s26 }
 0x270   : > { %2235 = vmatpush3.xpose.msk.msra.mxu1 %vm649_vm2, %v508_v58 }
 0x271   : > { %2239 = vmatprep.subr.mxu1 %v2661_v47 }
 0x272   : > { %v2233_v63 = vpop.f32.mrf.mxu0 }
 0x273   : > { %v2894_v0 = vadd.f32 %v2233_v63, %v523_v60  ;;  %2237 = vmatmul.mubr.msk.f32.vlgmr.msra.gmra.mxu1 %vm649_vm2, %v599_v59  ;;  %620 = vrot.lane.b32.xlu1 %v508_v58, %s2665_s14 }
 0x274   : > { %623 = vrot.lane.b32.xlu0 %v513_v62, %s2664_s26  ;;  %2241 = vmatprep.mubr.msk.f32.mxu1 %vm2662_vm1, %v2661_v47  ;;  %v590_v10 = vpop.f32.mrf.mxu0 }
 0x275   : > { %v2927_v12 = vadd.f32 %v590_v10, %v523_v60 }
 0x277   : > { %609 = vrot.lane.b32.xlu1 %v600_v1, %s2664_s26 }
 0x278   : > { %604 = vrot.lane.b32.xlu0 %v599_v59, %s2663_s24 }
 0x27b   : > { %602 = vrot.lane.b32.xlu1 %v599_v59, %s2664_s26 }
 0x27c   : > { %625 = vrot.lane.b32.xlu0 %v513_v62, %s2663_s24 }
 0x27f   : > { %606 = vrot.lane.b32.xlu1 %v599_v59, %s2665_s14 }
 0x280   : > { %611 = vrot.lane.b32.xlu0 %v600_v1, %s2663_s24 }
 0x283   : > { %627 = vrot.lane.b32.xlu1 %v513_v62, %s2665_s14 }
 0x287   : > { %613 = vrot.lane.b32.xlu1 %v600_v1, %s2665_s14 }
 0x2e1   : > { %v619_v2 = vpop.permute.xlu1 %618  ;;  %v617_v3 = vpop.permute.xlu0 %616 }
 0x2e2   : > { %2240 = vmatpush3.xpose.msk.msra.mxu1 %vm649_vm2, %v617_v3  ;;  %2245 = vmatpush3.xpose.msk.msra.mxu0 %vm649_vm2, %v619_v2 }
 0x2e3   : > { %2254 = vmatprep.subr.mxu0 %v2661_v47  ;;  %2249 = vmatprep.subr.mxu1 %v2661_v47 }
 0x2e5   : > { %v621_v4 = vpop.permute.xlu1 %620 }
 0x2e6   : > { %v624_v5 = vpop.permute.xlu0 %623 }
 0x2e9   : > { %v610_v6 = vpop.permute.xlu1 %609 }
 0x2ea   : > { %v605_v7 = vpop.permute.xlu0 %604 }
 0x2eb   : > { %2247 = vmatmul.mubr.msk.f32.vlgmr.msra.gmra.mxu0 %vm649_vm2, %v605_v7 }
 0x2ec   : > { %2255 = vmatpush3.xpose.msk.msra.mxu0 %vm649_vm2, %v513_v62  ;;  %2256 = vmatprep.mubr.msk.f32.mxu0 %vm2662_vm1, %v2661_v47 }
 0x2ed   : > { %2264 = vmatprep.subr.mxu0 %v2661_v47  ;;  %v603_v8 = vpop.permute.xlu1 %602 }
 0x2ee   : > { %v626_v9 = vpop.permute.xlu0 %625  ;;  %2242 = vmatmul.mubr.msk.f32.vlgmr.msra.gmra.mxu1 %vm649_vm2, %v603_v8 }
 0x2ef   : > { %2250 = vmatpush3.xpose.msk.msra.mxu1 %vm649_vm2, %v621_v4  ;;  %2257 = vmatmul.mubr.msk.f32.vlgmr.msra.gmra.mxu0 %vm649_vm2, %v600_v1 }
 0x2f0   : > { %2265 = vmatpush3.xpose.msk.msra.mxu0 %vm649_vm2, %v626_v9  ;;  %2266 = vmatprep.mubr.msk.f32.mxu0 %vm2662_vm1, %v2661_v47 }
 0x2f1   : > { %2274 = vmatprep.subr.mxu0 %v2661_v47  ;;  %v607_v11 = vpop.permute.xlu1 %606  ;;  %2251 = vmatprep.mubr.msk.f32.mxu1 %vm2662_vm1, %v2661_v47 }
 0x2f2   : > { %v612_v13 = vpop.permute.xlu0 %611  ;;  %2259 = vmatprep.subr.mxu1 %v2661_v47  ;;  %2252 = vmatmul.mubr.msk.f32.vlgmr.msra.gmra.mxu1 %vm649_vm2, %v607_v11 }
 0x2f3   : > { %2260 = vmatpush3.xpose.msk.msra.mxu1 %vm649_vm2, %v624_v5  ;;  %2267 = vmatmul.mubr.msk.f32.vlgmr.msra.gmra.mxu0 %vm649_vm2, %v612_v13 }
 0x2f4   : > { %2275 = vmatpush3.msra.mxu0 %v2927_v12  ;;  %2261 = vmatprep.mubr.msk.f32.mxu1 %vm2662_vm1, %v2661_v47 }
 0x2f5   : > { %v628_v14 = vpop.permute.xlu1 %627  ;;  %2269 = vmatprep.subr.mxu1 %v2661_v47  ;;  %2276 = vmatprep.mubr.msk.f32.mxu0 %vm2662_vm1, %v2661_v47 }
 0x2f6   : > { %2262 = vmatmul.mubr.msk.f32.vlgmr.msra.gmra.mxu1 %vm649_vm2, %v610_v6  ;;  %2284 = vmatprep.subr.mxu0 %v2661_v47 }
 0x2f7   : > { %2270 = vmatpush3.xpose.msk.msra.mxu1 %vm649_vm2, %v628_v14  ;;  %2271 = vmatprep.mubr.msk.f32.mxu1 %vm2662_vm1, %v2661_v47 }
 0x2f8   : > { %2279 = vmatprep.subr.mxu1 %v2661_v47 }
 0x2f9   : > { %v614_v15 = vpop.permute.xlu1 %613 }
 0x2fa   : > { %2272 = vmatmul.mubr.msk.f32.vlgmr.msra.gmra.mxu1 %vm649_vm2, %v614_v15 }
 0x2fb   : > { %2281 = vmatprep.mubr.msk.f32.mxu1 %vm2662_vm1, %v2661_v47 }
 0x333   : > { %v720_v16 = vpop.f32.mrf.mxu1 }
 0x334   : > { %v1242_v17 = vsel %vm649_vm2, %v720_v16, -inf }
 0x335   : > { %1243 = vmax.xlane.f32.xlu0 %v1242_v17  ;;  %v2238_v18 = vpop.f32.mrf.mxu1 }
 0x3ab   : > { %v868_v19 = vpop.f32.mrf.mxu0 }
 0x3ac   : > { %v1248_v20 = vsel %vm649_vm2, %v868_v19, -inf }
 0x3ad   : > { %v2248_v21 = vpop.f32.mrf.mxu0  ;;  %1249 = vmax.xlane.f32.xlu0 %v1248_v20 }
 0x3ae   : > { %v794_v22 = vpop.f32.mrf.mxu1 }
 0x3af   : > { %v1016_v23 = vpop.f32.mrf.mxu0  ;;  %v1245_v24 = vsel %vm649_vm2, %v794_v22, -inf }
 0x3b0   : > { %1246 = vmax.xlane.f32.xlu1 %v1245_v24  ;;  %v2243_v25 = vpop.f32.mrf.mxu1  ;;  %v1254_v33 = vsel %vm649_vm2, %v1016_v23, -inf }
 0x3b1   : > { %v2258_v26 = vpop.f32.mrf.mxu0 }
 0x3b2   : > { %v942_v27 = vpop.f32.mrf.mxu1 }
 0x3b3   : > { %v1164_v28 = vpop.f32.mrf.mxu0  ;;  %v1251_v29 = vsel %vm649_vm2, %v942_v27, -inf }
 0x3b4   : > { %1252 = vmax.xlane.f32.xlu0 %v1251_v29  ;;  %v2253_v30 = vpop.f32.mrf.mxu1  ;;  %v1260_v37 = vsel %vm649_vm2, %v1164_v28, -inf }
 0x3b5   : > { %v2268_v31 = vpop.f32.mrf.mxu0 }
 0x3b6   : > { %v1090_v32 = vpop.f32.mrf.mxu1 }
 0x3b7   : > { %v1257_v34 = vsel %vm649_vm2, %v1090_v32, -inf }
 0x3b8   : > { %1255 = vmax.xlane.f32.xlu0 %v1254_v33  ;;  %1258 = vmax.xlane.f32.xlu1 %v1257_v34  ;;  %v2263_v35 = vpop.f32.mrf.mxu1 }
 0x3ba   : > { %v2954_v36 = vpop.f32.mrf.mxu1 }
 0x3bb   : > { %v1263_v38 = vsel %vm649_vm2, %v2954_v36, -inf }
 0x3bc   : > { %1261 = vmax.xlane.f32.xlu0 %v1260_v37  ;;  %1264 = vmax.xlane.f32.xlu1 %v1263_v38  ;;  %v2273_v39 = vpop.f32.mrf.mxu1 }
 0x3be   : > { %v1244_v40 = vpop.xlane.xlu0 %1243 }
 0x3bf   : > { %v1266_v41 = vsub.f32 %v720_v16, %v1244_v40 }
 0x3c1   : > { %v1274_v42 = vmul.f32 1.442695, %v1266_v41 }
 0x3c3   : > { %2416 = vpow2.f32 %v1274_v42 }
 0x3d0   : > { %v2417_v43 = vpop.eup %2416 }
 0x3d1   : > { %v1290_v44 = vsel %vm649_vm2, %v2417_v43, 0.0 }
 0x3d2   : > { %1291 = vadd.xlane.f32.xlu0 %v1290_v44 }
 0x436   : > { %v1250_v45 = vpop.xlane.xlu0 %1249 }
 0x437   : > { %v1268_v46 = vsub.f32 %v868_v19, %v1250_v45 }
 0x439   : > { %v1278_v48 = vmul.f32 1.442695, %v1268_v46  ;;  %v1247_v49 = vpop.xlane.xlu1 %1246 }
 0x43a   : > { %v1267_v50 = vsub.f32 %v794_v22, %v1247_v49 }
 0x43b   : > { %2418 = vpow2.f32 %v1278_v48 }
 0x43c   : > { %v1276_v51 = vmul.f32 1.442695, %v1267_v50 }
 0x43d   : > { %v1253_v52 = vpop.xlane.xlu0 %1252 }
 0x43e   : > { %2420 = vpow2.f32 %v1276_v51  ;;  %v1269_v53 = vsub.f32 %v942_v27, %v1253_v52 }
 0x440   : > { %v1280_v54 = vmul.f32 1.442695, %v1269_v53 }
 0x441   : > { %v1256_v55 = vpop.xlane.xlu0 %1255  ;;  %v1259_v56 = vpop.xlane.xlu1 %1258 }
 0x442   : > { %2422 = vpow2.f32 %v1280_v54  ;;  %v1270_v57 = vsub.f32 %v1016_v23, %v1256_v55  ;;  %v1271_v58 = vsub.f32 %v1090_v32, %v1259_v56 }
 0x444   : > { %v1282_v59 = vmul.f32 1.442695, %v1270_v57  ;;  %v1284_v60 = vmul.f32 1.442695, %v1271_v58 }
 0x445   : > { %v1262_v61 = vpop.xlane.xlu0 %1261  ;;  %v1265_v20 = vpop.xlane.xlu1 %1264 }
 0x446   : > { %2424 = vpow2.f32 %v1282_v59  ;;  %v1272_v62 = vsub.f32 %v1164_v28, %v1262_v61  ;;  %v1273_v21 = vsub.f32 %v2954_v36, %v1265_v20 }
 0x447   : > { %2426 = vpow2.f32 %v1284_v60 }
 0x448   : > { %v2960_v63 = vpop.eup %2418  ;;  %v1286_v1 = vmul.f32 1.442695, %v1272_v62  ;;  %v1288_v22 = vmul.f32 1.442695, %v1273_v21 }
 0x449   : > { %v1296_v2 = vsel %vm649_vm2, %v2960_v63, 0.0 }
 0x44a   : > { %2428 = vpow2.f32 %v1286_v1  ;;  %1297 = vadd.xlane.f32.xlu0 %v1296_v2 }
 0x44b   : > { %v2964_v3 = vpop.eup %2420 }
 0x44c   : > { %v1293_v4 = vsel %vm649_vm2, %v2964_v3, 0.0 }
 0x44d   : > { %1294 = vadd.xlane.f32.xlu1 %v1293_v4 }
 0x44f   : > { %v2968_v5 = vpop.eup %2422 }
 0x450   : > { %v1299_v6 = vsel %vm649_vm2, %v2968_v5, 0.0 }
 0x451   : > { %1300 = vadd.xlane.f32.xlu1 %v1299_v6 }
 0x453   : > { %v2972_v7 = vpop.eup %2424 }
 0x454   : > { %v2974_v8 = vpop.eup %2426  ;;  %v1302_v9 = vsel %vm649_vm2, %v2972_v7, 0.0 }
 0x455   : > { %1303 = vadd.xlane.f32.xlu0 %v1302_v9  ;;  %v1305_v10 = vsel %vm649_vm2, %v2974_v8, 0.0 }
 0x456   : > { %1306 = vadd.xlane.f32.xlu1 %v1305_v10 }
 0x457   : > { %v2980_v11 = vpop.eup %2428 }
 0x458   : > { %v1308_v13 = vsel %vm649_vm2, %v2980_v11, 0.0 }
 0x459   : > { %1309 = vadd.xlane.f32.xlu0 %v1308_v13 }
 0x45b   : > { %v1292_v14 = vpop.xlane.xlu0 %1291 }
 0x45c   : > { %2430 = vrcp.f32 %v1292_v14 }
 0x45d   : > { %2432 = vpow2.f32 %v1288_v22 }
 0x467   : > { %633 = vrot.lane.b32.xlu1 %v2927_v12, %s2663_s24 }
 0x469   : > { %v2431_v15 = vpop.eup %2430 }
 0x46a   : > { %v1322_v16 = vmul.f32 %v2431_v15, %v1292_v14  ;;  %v2998_v23 = vpop.eup %2432 }
 0x46b   : > { %636 = vrot.lane.b32.xlu1 %v2927_v12, %s2665_s14  ;;  %v1311_v24 = vsel %vm649_vm2, %v2998_v23, 0.0 }
 0x46c   : > { %v1330_v17 = vsub.f32 2.0, %v1322_v16 }
 0x46e   : > { %v1338_v18 = vmul.f32 %v2431_v15, %v1330_v17 }
 0x46f   : > { %640 = vrot.lane.b32.xlu1 %v2894_v0, %s2664_s26  ;;  %630 = vrot.lane.b32.xlu0 %v2927_v12, %s2664_s26 }
 0x470   : > { %v1346_v19 = vmul.f32 %v2417_v43, %v1338_v18 }
 0x472   : > { %2277 = vmatmul.mubr.msk.f32.vlgmr.msra.gmra.mxu0 %vm649_vm2, %v1346_v19 }
 0x473   : > { %643 = vrot.lane.b32.xlu0 %v2894_v0, %s2663_s24  ;;  %2286 = vmatprep.mubr.msk.f32.mxu0 %vm2662_vm1, %v2661_v47  ;;  %s2586_s24 = scalar_lea.vmem %s2585_s7, 512 }
 0x474   : > { %p2588_p5 = scmp.lt.s32.totalorder %s2586_s24, %s2580_s22 }
 0x476   : > { %p2589_p7 = por %p2588_p5, %p2587_p3 }
 0x478   : > { %p2590_p13 = pnand %p2589_p7, %p2583_p8 }
 0x493   : > { %1312 = vadd.xlane.f32.xlu1 %v1311_v24 }
 0x4a4   : > { %646 = vrot.lane.b32.xlu1 %v2894_v0, %s2665_s14 }
 0x4d3   : > { %v1298_v12 = vpop.xlane.xlu0 %1297 }
 0x4d4   : > { %2434 = vrcp.f32 %v1298_v12 }
 0x4d6   : > { %v1295_v25 = vpop.xlane.xlu1 %1294 }
 0x4d7   : > { %2436 = vrcp.f32 %v1295_v25 }
 0x4da   : > { %v1301_v26 = vpop.xlane.xlu1 %1300 }
 0x4db   : > { %2438 = vrcp.f32 %v1301_v26 }
 0x4de   : > { %v1304_v27 = vpop.xlane.xlu0 %1303 }
 0x4df   : > { %2440 = vrcp.f32 %v1304_v27  ;;  %v1307_v28 = vpop.xlane.xlu1 %1306 }
 0x4e0   : > { %2442 = vrcp.f32 %v1307_v28 }
 0x4e1   : > { %v2435_v29 = vpop.eup %2434 }
 0x4e2   : > { %v1324_v30 = vmul.f32 %v2435_v29, %v1298_v12  ;;  %v1310_v31 = vpop.xlane.xlu0 %1309 }
 0x4e3   : > { %2444 = vrcp.f32 %v1310_v31  ;;  %v634_v32 = vpop.permute.xlu1 %633 }
 0x4e4   : > { %v2437_v33 = vpop.eup %2436  ;;  %v1332_v34 = vsub.f32 2.0, %v1324_v30  ;;  %2285 = vmatpush3.msra.mxu0 %v634_v32 }
 0x4e5   : > { %v1323_v35 = vmul.f32 %v2437_v33, %v1295_v25  ;;  %2294 = vmatprep.subr.mxu0 %v2661_v47 }
 0x4e6   : > { %v1340_v36 = vmul.f32 %v2435_v29, %v1332_v34  ;;  %v631_v37 = vpop.permute.xlu0 %630 }
 0x4e7   : > { %v1331_v38 = vsub.f32 2.0, %v1323_v35  ;;  %2280 = vmatpush3.msra.mxu1 %v631_v37  ;;  %v637_v45 = vpop.permute.xlu1 %636 }
 0x4e8   : > { %v2439_v39 = vpop.eup %2438  ;;  %v1348_v40 = vmul.f32 %v2960_v63, %v1340_v36  ;;  %2289 = vmatprep.subr.mxu1 %v2661_v47 }
 0x4e9   : > { %v1339_v41 = vmul.f32 %v2437_v33, %v1331_v38  ;;  %v1325_v42 = vmul.f32 %v2439_v39, %v1301_v26 }
 0x4ea   : > { %2287 = vmatmul.mubr.msk.f32.vlgmr.msra.gmra.mxu0 %vm649_vm2, %v1348_v40  ;;  %v644_v63 = vpop.permute.xlu0 %643 }
 0x4eb   : > { %v1347_v43 = vmul.f32 %v2964_v3, %v1339_v41  ;;  %v1333_v44 = vsub.f32 2.0, %v1325_v42  ;;  %2295 = vmatpush3.msra.mxu0 %v2894_v0  ;;  %2296 = vmatprep.mubr.msk.f32.mxu0 %vm2662_vm1, %v2661_v47  ;;  %v641_v57 = vpop.permute.xlu1 %640 }
 0x4ec   : > { %v2441_v46 = vpop.eup %2440  ;;  %2304 = vmatprep.subr.mxu0 %v2661_v47 }
 0x4ed   : > { %v2443_v48 = vpop.eup %2442  ;;  %v1341_v49 = vmul.f32 %v2439_v39, %v1333_v44  ;;  %v1326_v50 = vmul.f32 %v2441_v46, %v1304_v27  ;;  %2282 = vmatmul.mubr.msk.f32.vlgmr.msra.gmra.mxu1 %vm649_vm2, %v1347_v43 }
 0x4ee   : > { %v1327_v51 = vmul.f32 %v2443_v48, %v1307_v28  ;;  %2290 = vmatpush3.msra.mxu1 %v637_v45  ;;  %2291 = vmatprep.mubr.msk.f32.mxu1 %vm2662_vm1, %v2661_v47 }
 0x4ef   : > { %v1349_v52 = vmul.f32 %v2968_v5, %v1341_v49  ;;  %v1334_v53 = vsub.f32 2.0, %v1326_v50  ;;  %2299 = vmatprep.subr.mxu1 %v2661_v47 }
 0x4f0   : > { %v2445_v0 = vpop.eup %2444  ;;  %v1335_v54 = vsub.f32 2.0, %v1327_v51 }
 0x4f1   : > { %v1342_v55 = vmul.f32 %v2441_v46, %v1334_v53  ;;  %v1328_v56 = vmul.f32 %v2445_v0, %v1310_v31  ;;  %2292 = vmatmul.mubr.msk.f32.vlgmr.msra.gmra.mxu1 %vm649_vm2, %v1349_v52 }
 0x4f2   : > { %v1343_v58 = vmul.f32 %v2443_v48, %v1335_v54  ;;  %2300 = vmatpush3.msra.mxu1 %v641_v57  ;;  %2301 = vmatprep.mubr.msk.f32.mxu1 %vm2662_vm1, %v2661_v47 }
 0x4f3   : > { %v1350_v59 = vmul.f32 %v2972_v7, %v1342_v55  ;;  %v1336_v60 = vsub.f32 2.0, %v1328_v56  ;;  %2309 = vmatprep.subr.mxu1 %v2661_v47 }
 0x4f4   : > { %v1351_v61 = vmul.f32 %v2974_v8, %v1343_v58 }
 0x4f5   : > { %v1344_v62 = vmul.f32 %v2445_v0, %v1336_v60  ;;  %2297 = vmatmul.mubr.msk.f32.vlgmr.msra.gmra.mxu0 %vm649_vm2, %v1350_v59 }
 0x4f6   : > { %2302 = vmatmul.mubr.msk.f32.vlgmr.msra.gmra.mxu1 %vm649_vm2, %v1351_v61  ;;  %2305 = vmatpush3.msra.mxu0 %v644_v63 }
 0x4f7   : > { %v1352_v1 = vmul.f32 %v2980_v11, %v1344_v62  ;;  %2306 = vmatprep.mubr.msk.f32.mxu0 %vm2662_vm1, %v2661_v47  ;;  %2311 = vmatprep.mubr.msk.f32.mxu1 %vm2662_vm1, %v2661_v47 }
 0x4f9   : > { %2307 = vmatmul.mubr.msk.f32.vlgmr.msra.gmra.mxu0 %vm649_vm2, %v1352_v1 }
 0x51c   : > { %v1313_v2 = vpop.xlane.xlu1 %1312 }
 0x51d   : > { %2446 = vrcp.f32 %v1313_v2 }
 0x520   : > { %v647_v3 = vpop.permute.xlu1 %646 }
 0x521   : > { %2310 = vmatpush3.msra.mxu1 %v647_v3 }
 0x52a   : > { %v2447_v4 = vpop.eup %2446 }
 0x52b   : > { %v1329_v5 = vmul.f32 %v2447_v4, %v1313_v2 }
 0x52d   : > { %v1337_v6 = vsub.f32 2.0, %v1329_v5 }
 0x52f   : > { %v1345_v7 = vmul.f32 %v2447_v4, %v1337_v6 }
 0x531   : > { %v1353_v8 = vmul.f32 %v2998_v23, %v1345_v7 }
 0x532   : > { %v1423_v9 = vpop.f32.mrf.mxu0 }
 0x533   : > { %2312 = vmatmul.mubr.msk.f32.vlgmr.msra.gmra.mxu1 %vm649_vm2, %v1353_v8 }
 0x534   : > { %v2278_v10 = vpop.f32.mrf.mxu0 }
 0x5aa   : > { %v1569_v11 = vpop.f32.mrf.mxu0 }
 0x5ac   : > { %v2288_v13 = vpop.f32.mrf.mxu0 }
 0x5ad   : > { %v1496_v14 = vpop.f32.mrf.mxu1 }
 0x5ae   : > { %1939 = vrot.lane.b32.xlu0 %v1496_v14, %s2666_s28 }
 0x5af   : > { %v2283_v47 = vpop.f32.mrf.mxu1 }
 0x5b1   : > { %v1642_v15 = vpop.f32.mrf.mxu1 }
 0x5b2   : > { %1943 = vrot.lane.b32.xlu0 %v1569_v11, %s2667_s6 }
 0x5b3   : > { %v2293_v16 = vpop.f32.mrf.mxu1 }
 0x5b5   : > { %v1715_v17 = vpop.f32.mrf.mxu0 }
 0x5b6   : > { %v1788_v18 = vpop.f32.mrf.mxu1  ;;  %1947 = vrot.lane.b32.xlu0 %v1642_v15, %s2668_s8 }
 0x5b7   : > { %1956 = vrot.lane.b32.xlu1 %v1788_v18, %s2666_s28  ;;  %v2298_v19 = vpop.f32.mrf.mxu0 }
 0x5b8   : > { %v2303_v20 = vpop.f32.mrf.mxu1 }
 0x5b9   : > { %v1861_v21 = vpop.f32.mrf.mxu0 }
 0x5bb   : > { %1960 = vrot.lane.b32.xlu1 %v1861_v21, %s2667_s6  ;;  %v2308_v22 = vpop.f32.mrf.mxu0 }
 0x5f3   : > { %v1934_v23 = vpop.f32.mrf.mxu1 }
 0x5f4   : > { %1964 = vrot.lane.b32.xlu1 %v1934_v23, %s2668_s8 }
 0x5f5   : > { %v2313_v24 = vpop.f32.mrf.mxu1 }
 0x620   : > { %v1940_v12 = vpop.permute.xlu0 %1939 }
 0x621   : > { %v1950_v26 = vsel %vm649_vm2, %v1423_v9, %v1940_v12 }
 0x624   : > { %v1944_v25 = vpop.permute.xlu0 %1943 }
 0x625   : > { %v1952_v27 = vsel %vm1951_vm3, %v1950_v26, %v1944_v25 }
 0x628   : > { %v1948_v28 = vpop.permute.xlu0 %1947 }
 0x629   : > { %v1954_v29 = vsel %vm1953_vm4, %v1952_v27, %v1948_v28  ;;  %v1957_v30 = vpop.permute.xlu1 %1956 }
 0x62a   : > { %1970 = vst.msk [vmem:[%s298_s23] sm:$0xff] %vm304_vm0, %v1954_v29  ;;  %v1967_v32 = vsel %vm649_vm2, %v1715_v17, %v1957_v30 }
 0x62d   : > { %v1961_v31 = vpop.permute.xlu1 %1960 }
 0x62e   : > { %v1968_v33 = vsel %vm1951_vm3, %v1967_v32, %v1961_v31 }
 0x666   : > { %v1965_v34 = vpop.permute.xlu1 %1964 }
 0x667   : > { %v1969_v35 = vsel %vm1953_vm4, %v1968_v33, %v1965_v34 }
 0x668   : > { %1971 = vst.msk [vmem:[%s298_s23 + $0x8] sm:$0xff] %vm304_vm0, %v1969_v35 }
 0x669   : > { %2593 = shalt.err (!%p2590_p13)
}
 0x66a   : > { %s2594_s26 = scalar_lea.hbm %s3048_s29, 256  ;;  %s2598_s8 = scalar_lea.hbm %s3099_s5, 512 }
 0x66b   : > { %p2595_p10 = scmp.ne.s32.totalorder %s3048_s29, %s2594_s26  ;;  %p2599_p0 = scmp.lt.s32.totalorder %s3048_s29, %s3099_s5 }
 0x66c   : > { %p2600_p1 = scmp.lt.s32.totalorder %s2598_s8, %s2594_s26 }
 0x66d   : > { %p2596_p9 = pnand %p2595_p10, %p3119_p4 }
 0x66e   : > { %p2601_p2 = por %p2600_p1, %p2599_p0 }
 0x66f   : > { %p2597_p11 = pneg %p2596_p9 }
 0x671   : > { %p2602_p12 = pnand %p2601_p2, %p2597_p11 }
 0x673   : > { %2605 = shalt.err (!%p2602_p12)
}
 0x674   : > { %s2670_s30 = smov 128  }
 0x675   : > { %2332 = dma.vmem_to_hbm [thread:$0]  (%p3119_p4), %s3042_s27, 256, %s3048_s29, %s1973_s13, %s2670_s30, %s2670_s30, %s2666_s28  }
 0x676 PF: > { %s2001_s10 = sand.u32 1, %s2640_s18   ;;  %p3120_p6 = scmp.ne.s32.totalorder %s3106_s25, 0 }
 0x677   : > { %p3121_p8 = scmp.ge.s32.totalorder %s2652_s21, 2  ;;  %s2002_s22 = scalar_lea.sflag [#allocation4], %s2001_s10 }
 0x679   : > { %p2352_p3 = pnand %p3121_p8, %p3120_p6 }
 0x67b   : > { %p2353_p5 = pneg %p2352_p3 }
 0x67d   : > { %2635 = dma.done.wait (%p2353_p5), %s2002_s22, 256  }
 0x67e   : > { %2637 = vsyncadd (%p2353_p5), %s2002_s22, 4294967040  ;;  %p20_p7 = scmp.ge.s32.totalorder %s2798_s9, 4   ;;  %s3122_s18 = smov %s2644_s19 }
 0x67f   : > { %s3123_s19 = smov %s2648_s20  ;;  %s3124_s20 = smov %s2814_s12 }
 0x680   : > { %s3125_s21 = smov %s2798_s9  ;;  %22 = sbr.rel (!%p20_p7) target bundleno = 7 (0x7), region = 101 }
 0x685   :  { %2007 = vsyncpa [#allocation3], 1 }
 0x686   :  { %2009 = vsyncpa [#allocation3 + $0x1], 1 }
 0x687   :  { %2010 = vsyncpa [#allocation6], 1 }
 0x688   :  { %2011 = vsyncpa [#allocation9], 1 }
 0x689   :  { %2012 = vsyncpa [#allocation4], 1 }
 0x68a   :  { %2014 = vsyncpa [#allocation4 + $0x1], 1 }

// kernel: tpu_custom_call.1
= control target key start
LH: loop header
LB: loop body
LE: loop exit
PB: predicated region body
PF: predicated region fallthrough
CT: control target
= control target key end

     0   :  { %10 = vsyncpa [#allocation3], 0  ;;  %s3094_s0 = inlined_call_operand.hbm [shape: f32[4,8,32], index: 0, kind: input, shape index: {}]   ;;  %s3095_s1 = inlined_call_operand.hbm [shape: f32[5,32], index: 1, kind: input, shape index: {}]   ;;  %s3096_s2 = inlined_call_operand.hbm [shape: f32[32,32], index: 2, kind: input, shape index: {}]   ;;  %s3097_s3 = inlined_call_operand.hbm [shape: f32[32,32], index: 3, kind: input, shape index: {}]   ;;  %s3098_s4 = inlined_call_operand.hbm [shape: f32[32,32], index: 4, kind: input, shape index: {}]   ;;  %s3099_s5 = inlined_call_operand.hbm [shape: f32[4,8,32], index: 5, kind: output, shape index: {}]  }
   0x1   :  { %12 = vsyncpa [#allocation3 + $0x1], 0 }
   0x2   :  { %13 = vsyncpa [#allocation6], 0 }
   0x3   :  { %14 = vsyncpa [#allocation9], 0 }
   0x4   :  { %15 = vsyncpa [#allocation4], 0 }
   0x5   :  { %17 = vsyncpa [#allocation4 + $0x1], 0  ;;  %s2701_s18 = smov 0   ;;  %s2703_s19 = smov 0  }
   0x6   :  { %s2705_s20 = smov 0   ;;  %s2707_s21 = smov 0  }
   0x7 LB: > { %s2722_s22 = sadd.s32 4294967295, %s2652_s21   ;;  %s2097_s23 = sadd.s32 4294967294, %s2652_s21   ;;  %s2652_s21 = sphi %s2707_s21, %s3125_s21   ;;  %s2648_s20 = sphi %s2705_s20, %s3124_s20   ;;  %s2644_s19 = sphi %s2703_s19, %s3123_s19   ;;  %s2640_s18 = sphi %s2701_s18, %s3122_s18  }
   0x8   : > { %p43_p0 = scmp.ne.s32.totalorder %s2644_s19, %s2640_s18  ;;  %p3100_p1 = scmp.eq.s32.totalorder %s2722_s22, 0 }
   0x9   : > { %p157_p3 = scmp.eq.s32.totalorder %s2097_s23, 1  ;;  %p2098_p5 = scmp.ge.s32.totalorder %s2652_s21, 1 }
   0xa   : > { %p2731_p4 = por %p3100_p1, %p43_p0  ;;  %p164_p7 = scmp.lt.s32.totalorder %s2652_s21, 3 }
   0xb   : > { %p2736_p6 = por %p157_p3, %p43_p0  ;;  %s2654_s27 = smov [#allocation5]  }
   0xc   : > { %s3105_s24 = scalar_select %p2731_p4, 1, 0 }
   0xd   : > { %s3106_s25 = scalar_select %p2736_p6, 1, 0 }
   0xe   : > { %p2741_p8 = pnand %p2098_p5, %p164_p7  ;;  %s177_s28 = sshll.u32 %s2654_s27, 4  ;;  %s178_s28 = int_to_ptr.vmem [resolvable:$true] %s177_s28 }
   0xf   : > { %s2655_s30 = smov [#allocation8]   ;;  %s2656_s7 = smov [#allocation7]  }
  0x10   : > { %s3107_s26 = scalar_select %p2741_p8, 1, 0 }
  0x11   : > { %p2334_p10 = pneg %p2741_p8  ;;  %s200_s6 = sshll.u32 %s2655_s30, 4  ;;  %s201_s6 = int_to_ptr.vmem [resolvable:$true] %s200_s6 }
  0x12   : > { %s187_s8 = sshll.u32 %s2656_s7, 4  ;;  %s2459_s9 = scalar_lea.vmem %s178_s28, 128  ;;  %s188_s8 = int_to_ptr.vmem [resolvable:$true] %s187_s8 }
  0x13   : > { %p2750_p11 = pnand %p2334_p10, %p3100_p1  ;;  %p2460_p13 = scmp.ne.s32.totalorder %s178_s28, %s2459_s9 }
  0x14   : > { %p2467_p5 = scmp.lt.s32.totalorder %s178_s28, %s178_s28  ;;  %p2468_p7 = scmp.lt.s32.totalorder %s2459_s9, %s2459_s9 }
  0x15   : > { %p2450_p12 = pneg %p2750_p11 }
  0x16   : > { %p2469_p10 = por %p2468_p7, %p2467_p5 }
  0x17   : > { %p2462_p0 = pnand %p2460_p13, %p2450_p12 }
  0x19   : > { %p2463_p3 = pneg %p2462_p0 }
  0x1b   : > { %p2470_p9 = pnand %p2469_p10, %p2463_p3 }
  0x1d   : > { %2473 = shalt.err (!%p2470_p9)
}
  0x1e   : > { %2337 = dma.hbm_to_vmem [thread:$0]  (!%p2750_p11), %s3095_s1, 128, %s178_s28, [#allocation6]  }
  0x1f   : > { %s2485_s12 = scalar_lea.vmem %s201_s6, 512  ;;  %p2493_p13 = scmp.lt.s32.totalorder %s201_s6, %s201_s6 }
  0x20   : > { %p2486_p1 = scmp.ne.s32.totalorder %s201_s6, %s2485_s12  ;;  %p2494_p0 = scmp.lt.s32.totalorder %s2485_s12, %s2485_s12 }
  0x22   : > { %p2488_p2 = pnand %p2486_p1, %p2450_p12  ;;  %p2495_p4 = por %p2494_p0, %p2493_p13 }
  0x24   : > { %p2489_p6 = pneg %p2488_p2 }
  0x26   : > { %p2496_p8 = pnand %p2495_p4, %p2489_p6 }
  0x28   : > { %2499 = shalt.err (!%p2496_p8)
}
  0x29   : > { %s3103_s13 = smov 128   ;;  %s2658_s14 = smov 8  }
  0x2a   : > { %2343 = dma.hbm_to_vmem [thread:$0]  (!%p2750_p11), %s3097_s3, 512, %s201_s6, [#allocation9], %s3103_s13, %s3103_s13, %s2658_s14  }
  0x2b   : > { %s2511_s17 = scalar_lea.vmem %s188_s8, 512  ;;  %p2519_p6 = scmp.lt.s32.totalorder %s188_s8, %s188_s8 }
  0x2c   : > { %p2512_p1 = scmp.ne.s32.totalorder %s188_s8, %s2511_s17  ;;  %p2520_p8 = scmp.lt.s32.totalorder %s2511_s17, %s2511_s17 }
  0x2e   : > { %p2514_p2 = pnand %p2512_p1, %p2450_p12  ;;  %p2521_p9 = por %p2520_p8, %p2519_p6 }
  0x30   : > { %p2515_p4 = pneg %p2514_p2 }
  0x32   : > { %p2522_p3 = pnand %p2521_p9, %p2515_p4 }
  0x34   : > { %2525 = shalt.err (!%p2522_p3)
}
  0x35   : > { %2340 = dma.hbm_to_vmem [thread:$0]  (!%p2750_p11), %s3096_s2, 512, %s188_s8, [#allocation6], %s3103_s13, %s3103_s13, %s2658_s14  }
  0x36   : > { %s2659_s28 = smov [#allocation10]  }
  0x37   : > { %s213_s30 = sshll.u32 %s2659_s28, 4  ;;  %s214_s30 = int_to_ptr.vmem [resolvable:$true] %s213_s30 }
  0x38   : > { %s2537_s6 = scalar_lea.vmem %s214_s30, 512  ;;  %p2545_p13 = scmp.lt.s32.totalorder %s214_s30, %s214_s30 }
  0x39   : > { %p2538_p5 = scmp.ne.s32.totalorder %s214_s30, %s2537_s6  ;;  %p2546_p0 = scmp.lt.s32.totalorder %s2537_s6, %s2537_s6 }
  0x3b   : > { %p2540_p7 = pnand %p2538_p5, %p2450_p12  ;;  %p2547_p1 = por %p2546_p0, %p2545_p13 }
  0x3d   : > { %p2541_p10 = pneg %p2540_p7 }
  0x3f   : > { %p2548_p2 = pnand %p2547_p1, %p2541_p10 }
  0x41   : > { %2551 = shalt.err (!%p2548_p2)
}
  0x42   : > { %2346 = dma.hbm_to_vmem [thread:$0]  (!%p2750_p11), %s3098_s4, 512, %s214_s30, [#allocation9], %s3103_s13, %s3103_s13, %s2658_s14  }
  0x43   : > { %s2798_s9 = sadd.s32 1, %s2652_s21   ;;  %s30_s29 = sadd.s32 1, %s2648_s20 }
  0x44   : > { %s27_s10 = ssub.s32 %s2652_s21, %s2798_s9  ;;  %p37_p12 = scmp.ne.s32.totalorder %s2648_s20, %s2644_s19 }
  0x45   : > { %p28_p4 = scmp.eq.s32.totalorder %s27_s10, 0  ;;  %p38_p6 = scmp.eq.s32.totalorder %s2652_s21, 0 }
  0x46   : > { %p3109_p8 = scmp.eq.s32.totalorder %s2722_s22, 1  ;;  %p2359_p3 = scmp.lt.s32.totalorder %s2652_s21, 2 }
  0x47   : > { %s2814_s12 = scalar_select %p28_p4, %s2648_s20, %s30_s29  }
  0x48   : > { %p2808_p9 = por %p3109_p8, %p37_p12  ;;  %p39_p5 = por %p38_p6, %p37_p12 }
  0x49   : > { %s227_s15 = sand.u32 1, %s2648_s20   ;;  %s2149_s17 = sshll.u32 %s2652_s21, 8 }
  0x4a   : > { %s3110_s11 = scalar_select %p2808_p9, 1, 0 }
  0x4b   : > { %s2104_s16 = sshll.u32 %s227_s15, 4  ;;  %s2821_s28 = scalar_lea.hbm %s3094_s0, %s2149_s17 }
  0x4c   : > { %s231_s30 = scalar_lea.vmem [#allocation2], %s2104_s16  ;;  %p2825_p11 = pnand %p2359_p3, %p39_p5 }
  0x4d   : > { %s238_s6 = sshll.u32 %s231_s30, 4  ;;  %s2829_s8 = scalar_lea.sflag [#allocation3], %s227_s15  ;;  %s2823_s6 = int_to_ptr.vmem [resolvable:$true] %s238_s6 }
  0x4e   : > { %s2552_s29 = scalar_lea.hbm %s2821_s28, 256  ;;  %p2554_p10 = pneg %p2825_p11 }
  0x4f   : > { %p2553_p7 = scmp.ne.s32.totalorder %s2821_s28, %s2552_s29  ;;  %s2557_s16 = scalar_lea.hbm %s3094_s0, 512 }
  0x50   : > { %p2558_p1 = scmp.lt.s32.totalorder %s2821_s28, %s3094_s0  ;;  %p2559_p2 = scmp.lt.s32.totalorder %s2557_s16, %s2552_s29 }
  0x51   : > { %p2555_p13 = pnand %p2554_p10, %p2553_p7 }
  0x52   : > { %p2560_p12 = por %p2559_p2, %p2558_p1 }
  0x53   : > { %p2556_p0 = pneg %p2555_p13 }
  0x55   : > { %p2561_p4 = pnand %p2560_p12, %p2556_p0 }
  0x57   : > { %2564 = shalt.err (!%p2561_p4)
}
  0x58   : > { %s2565_s15 = scalar_lea.vmem %s2823_s6, 256  ;;  %s2660_s30 = smov [#allocation2]  }
  0x59   : > { %p2566_p6 = scmp.ne.s32.totalorder %s2823_s6, %s2565_s15  ;;  %s2570_s13 = sshll.u32 %s2660_s30, 4  ;;  %s2571_s13 = int_to_ptr.vmem [resolvable:$false] %s2570_s13 }
  0x5a   : > { %s2572_s10 = scalar_lea.vmem %s2571_s13, 512  ;;  %p2573_p5 = scmp.lt.s32.totalorder %s2823_s6, %s2571_s13 }
  0x5b   : > { %p2568_p8 = pnand %p2566_p6, %p2554_p10  ;;  %p2574_p7 = scmp.lt.s32.totalorder %s2572_s10, %s2565_s15 }
  0x5d   : > { %p2569_p3 = pneg %p2568_p8  ;;  %p2575_p13 = por %p2574_p7, %p2573_p5 }
  0x5f   : > { %p2576_p9 = pnand %p2575_p13, %p2569_p3 }
  0x61   : > { %2579 = shalt.err (!%p2576_p9)
}
  0x62   : > { %s3112_s29 = smov 128   ;;  %p3113_p10 = scmp.ne.s32.totalorder %s3107_s26, 0 }
  0x63   : > { %2350 = dma.hbm_to_vmem [thread:$0]  (!%p2825_p11), %s2821_s28, 256, %s2823_s6, %s2829_s8, %s3112_s29, %s3112_s29, %s2658_s14  }
  0x64   : > { %250 = sbr.rel (%p3113_p10) target bundleno = 1654 (0x676), region = 40  ;;  %s2856_s17 = sand.u32 (!%p3113_p10), 1, %s2644_s19  }
  0x65   : > { %s2108_s13 = sshll.u32 (!%p3113_p10), %s2856_s17, 4  ;;  %s253_s16 = scalar_lea.sflag (!%p3113_p10), [#allocation3], %s2856_s17 }
  0x66   : > { %s256_s7 = scalar_lea.vmem (!%p3113_p10), [#allocation2], %s2108_s13  ;;  %p3114_p9 = scmp.ne.s32.totalorder (!%p3113_p10), %s3105_s24, 0 }
  0x69   : > { %2623 = dma.done.wait (%p3114_p9), %s253_s16, 256  }
  0x6a   : > { %2625 = vsyncadd (%p3114_p9), %s253_s16, 4294967040  ;;  %p3115_p11 = scmp.eq.s32.totalorder %s2722_s22, 0 }
  0x6c   : > { %2627 = dma.done.wait (%p3115_p11), [#allocation6], 640   ;;  %p3116_p0 = pmov %p3115_p11 }
  0x6e   : > { %2629 = vsyncadd (%p3116_p0), [#allocation6], 4294966656  ;;  %p3117_p1 = pmov %p3116_p0 }
  0x6f   : > { %p3118_p2 = pmov %p3116_p0 }
  0x70   : > { %2631 = dma.done.wait (%p3117_p1), [#allocation9], 1024  }
  0x71   : > { %2633 = vsyncadd (%p3118_p2), [#allocation9], 4294966272  ;;  %vm304_vm0 = vcmask 261120   ;;  %v301_v0 = vld [vmem:[%s256_s7] sm:$0xff]  ;;  %v302_v1 = vld [vmem:[%s256_s7 + $0x8] sm:$0xff]  ;;  %v332_v28 = vlaneseq  ;;  %v2661_v47 = vmov 0.0  }
  0x72   : > { %v305_v2 = vsel %vm304_vm0, %v301_v0, 0.0  ;;  %v308_v3 = vsel %vm304_vm0, %v302_v1, 0.0  ;;  %v347_v14 = vld [vmem:[#allocation7 + $0x18] sm:$0xff]  ;;  %v346_v16 = vld [vmem:[#allocation7 + $0x10] sm:$0xff]  ;;  %v345_v18 = vld [vmem:[#allocation7 + $0x8] sm:$0xff]  ;;  %vm2662_vm1 = vmmov 0  }
  0x73   : > { %306 = vadd.xlane.f32.xlu0 %v305_v2  ;;  %v436_v15 = vld [vmem:[#allocation8 + $0x18] sm:$0xff]  ;;  %2201 = vmatprep.subr.mxu0 %v347_v14  ;;  %v435_v17 = vld [vmem:[#allocation8 + $0x10] sm:$0xff]  ;;  %v434_v19 = vld [vmem:[#allocation8 + $0x8] sm:$0xff]  ;;  %v333_v30 = vshrl.u32 %v332_v28, 7  ;;  %vm649_vm2 = vcmask 64512   ;;  %s2663_s24 = smov 112  }
  0x74   : > { %2212 = vmatprep.subr.mxu1 %v436_v15  ;;  %2202 = vmatpush3.msra.mxu0 %v347_v14  ;;  %v344_v20 = vld [vmem:[#allocation7] sm:$0xff]  ;;  %v519_v22 = vld [vmem:[#allocation10 + $0x18] sm:$0xff]  ;;  %v518_v44 = vld [vmem:[#allocation10 + $0x10] sm:$0xff]  ;;  %s2664_s26 = smov 120   ;;  %s2665_s14 = smov 104   ;;  %vm1951_vm3 = vcmask 130048  }
  0x75   : > { %2213 = vmatpush3.msra.mxu1 %v436_v15  ;;  %2203 = vmatprep.subr.mxu0 %v346_v16  ;;  %v433_v21 = vld [vmem:[#allocation8] sm:$0xff]  ;;  %v334_v31 = vsub.s32 0, %v333_v30  ;;  %v303_v32 = vld [vmem:[#allocation5] sm:$0x1f]  ;;  %v340_v33 = vsub.s32 1, %v333_v30  ;;  %v517_v45 = vld [vmem:[#allocation10 + $0x8] sm:$0xff] }
  0x76   : > { %2214 = vmatprep.subr.mxu1 %v435_v17  ;;  %2204 = vmatpush3.msra.mxu0 %v346_v16  ;;  %v516_v46 = vld [vmem:[#allocation10] sm:$0xff]  ;;  %v350_v48 = vsub.s32 2, %v333_v30  ;;  %v439_v49 = vsub.s32 3, %v333_v30  ;;  %v522_v54 = vsub.s32 4, %v333_v30  ;;  %s2666_s28 = smov 8   ;;  %s2667_s6 = smov 16  }
  0x77   : > { %309 = vadd.xlane.f32.xlu0 %v308_v3  ;;  %2215 = vmatpush3.msra.mxu1 %v435_v17  ;;  %v335_v34 = vrot.slane %v303_v32, %v334_v31  ;;  %v341_v37 = vrot.slane %v303_v32, %v340_v33  ;;  %s2668_s8 = smov 24   ;;  %vm1953_vm4 = vcmask 195584   ;;  %s298_s23 = scalar_lea.vmem [#allocation11], %s2108_s13 }
  0x78   : > { %2205 = vmatprep.subr.mxu0 %v345_v18  ;;  %2216 = vmatprep.subr.mxu1 %v434_v19  ;;  %v351_v52 = vrot.slane %v303_v32, %v350_v48  ;;  %v440_v53 = vrot.slane %v303_v32, %v439_v49  ;;  %v523_v60 = vrot.slane %v303_v32, %v522_v54  ;;  %s1986_s27 = sshll.u32 %s298_s23, 4  ;;  %s2150_s15 = sshll.u32 %s2722_s22, 8  ;;  %s3042_s27 = int_to_ptr.vmem [resolvable:$true] %s1986_s27 }
  0x79   : > { %2206 = vmatpush3.msra.mxu0 %v345_v18  ;;  %2217 = vmatpush3.msra.mxu1 %v434_v19  ;;  %s3048_s29 = scalar_lea.hbm %s3099_s5, %s2150_s15  ;;  %s1973_s13 = scalar_lea.sflag [#allocation4], %s2856_s17 }
  0x7a   : > { %2207 = vmatprep.subr.mxu0 %v344_v20  ;;  %2218 = vmatprep.subr.mxu1 %v433_v21  ;;  %s2580_s22 = scalar_lea.vmem %s3042_s27, 256  ;;  %p3119_p4 = scmp.ne.s32.totalorder %s3110_s11, 0 }
  0x7b   : > { %2208 = vmatpush3.msra.mxu0 %v344_v20  ;;  %2219 = vmatpush3.msra.mxu1 %v433_v21  ;;  %p2581_p12 = scmp.ne.s32.totalorder %s3042_s27, %s2580_s22  ;;  %s2669_s16 = smov [#allocation11]  }
  0x7c   : > { %2223 = vmatprep.subr.mxu0 %v519_v22  ;;  %2234 = vmatprep.subr.mxu1 %v2661_v47  ;;  %s2584_s7 = sshll.u32 %s2669_s16, 4  ;;  %s2585_s7 = int_to_ptr.vmem [resolvable:$false] %s2584_s7 }
  0x7d   : > { %p2582_p6 = pnand %p2581_p12, %p3119_p4  ;;  %p2587_p3 = scmp.lt.s32.totalorder %s3042_s27, %s2585_s7 }
  0x7f   : > { %p2583_p8 = pneg %p2582_p6 }
  0xfc   : > { %v307_v4 = vpop.xlane.xlu0 %306 }
  0xfd   : > { %v312_v5 = vmul.f32 0.03125, %v307_v4 }
  0xff   : > { %v314_v6 = vsub.f32 %v301_v0, %v312_v5 }
 0x100   : > { %v310_v7 = vpop.xlane.xlu0 %309 }
 0x101   : > { %v313_v8 = vmul.f32 0.03125, %v310_v7  ;;  %v316_v9 = vmul.f32 %v314_v6, %v314_v6 }
 0x103   : > { %v315_v10 = vsub.f32 %v302_v1, %v313_v8  ;;  %v318_v11 = vsel %vm304_vm0, %v316_v9, 0.0 }
 0x104   : > { %319 = vadd.xlane.f32.xlu1 %v318_v11 }
 0x105   : > { %v317_v12 = vmul.f32 %v315_v10, %v315_v10 }
 0x107   : > { %v321_v13 = vsel %vm304_vm0, %v317_v12, 0.0 }
 0x108   : > { %322 = vadd.xlane.f32.xlu1 %v321_v13 }
 0x18d   : > { %v320_v23 = vpop.xlane.xlu1 %319 }
 0x18e   : > { %v324_v24 = vmul.f32 0.03125, %v320_v23 }
 0x190   : > { %v326_v25 = vadd.f32 1e-05, %v324_v24 }
 0x191   : > { %v323_v26 = vpop.xlane.xlu1 %322 }
 0x192   : > { %2412 = vrsqrt.f32 %v326_v25  ;;  %v325_v27 = vmul.f32 0.03125, %v323_v26 }
 0x194   : > { %v327_v29 = vadd.f32 1e-05, %v325_v27 }
 0x196   : > { %2414 = vrsqrt.f32 %v327_v29 }
 0x19f   : > { %v2413_v35 = vpop.eup %2412 }
 0x1a0   : > { %v330_v36 = vmul.f32 %v2413_v35, %v314_v6 }
 0x1a2   : > { %v336_v38 = vmul.f32 %v335_v34, %v330_v36 }
 0x1a3   : > { %v2415_v39 = vpop.eup %2414 }
 0x1a4   : > { %v342_v40 = vadd.f32 %v341_v37, %v336_v38  ;;  %v331_v41 = vmul.f32 %v2415_v39, %v315_v10 }
 0x1a6   : > { %2209 = vmatprep.mubr.msk.f32.mxu0 %vm304_vm0, %v342_v40  ;;  %2220 = vmatprep.mubr.msk.f32.mxu1 %vm304_vm0, %v342_v40  ;;  %v337_v42 = vmul.f32 %v335_v34, %v331_v41 }
 0x1a8   : > { %v343_v43 = vadd.f32 %v341_v37, %v337_v42 }
 0x1aa   : > { %2210 = vmatmul.mubr.msk.f32.vlgmr.msra.gmra.mxu0 %vm304_vm0, %v343_v43  ;;  %2221 = vmatmul.mubr.msk.f32.vlgmr.msra.gmra.mxu1 %vm304_vm0, %v343_v43 }
 0x1ab   : > { %2224 = vmatpush3.msra.mxu0 %v519_v22  ;;  %2231 = vmatprep.mubr.msk.f32.mxu0 %vm304_vm0, %v342_v40 }
 0x1ac   : > { %2225 = vmatprep.subr.mxu0 %v518_v44  ;;  %2236 = vmatprep.mubr.msk.f32.mxu1 %vm2662_vm1, %v2661_v47 }
 0x1ad   : > { %2226 = vmatpush3.msra.mxu0 %v518_v44 }
 0x1ae   : > { %2227 = vmatprep.subr.mxu0 %v517_v45 }
 0x1af   : > { %2228 = vmatpush3.msra.mxu0 %v517_v45 }
 0x1b0   : > { %2229 = vmatprep.subr.mxu0 %v516_v46 }
 0x1b1   : > { %2230 = vmatpush3.msra.mxu0 %v516_v46 }
 0x1b2   : > { %2232 = vmatmul.mubr.msk.f32.vlgmr.msra.gmra.mxu0 %vm304_vm0, %v343_v43  ;;  %2244 = vmatprep.subr.mxu0 %v2661_v47 }
 0x1b3   : > { %2246 = vmatprep.mubr.msk.f32.mxu0 %vm2662_vm1, %v2661_v47 }
 0x26a   : > { %v2211_v50 = vpop.f32.mrf.mxu0  ;;  %v2222_v51 = vpop.f32.mrf.mxu1 }
 0x26b   : > { %v430_v61 = vadd.f32 %v2211_v50, %v351_v52  ;;  %v513_v62 = vadd.f32 %v2222_v51, %v440_v53 }
 0x26c   : > { %v424_v55 = vpop.f32.mrf.mxu0  ;;  %v507_v56 = vpop.f32.mrf.mxu1 }
 0x26d   : > { %v425_v57 = vadd.f32 %v424_v55, %v351_v52  ;;  %v508_v58 = vadd.f32 %v507_v56, %v440_v53  ;;  %v600_v1 = vmul.f32 0.35355338, %v430_v61 }
 0x26f   : > { %v599_v59 = vmul.f32 0.35355338, %v425_v57  ;;  %618 = vrot.lane.b32.xlu1 %v508_v58, %s2663_s24  ;;  %616 = vrot.lane.b32.xlu0 %v508_v58, %s2664_s26 }
 0x270   : > { %2235 = vmatpush3.xpose.msk.msra.mxu1 %vm649_vm2, %v508_v58 }
 0x271   : > { %2239 = vmatprep.subr.mxu1 %v2661_v47 }
 0x272   : > { %v2233_v63 = vpop.f32.mrf.mxu0 }
 0x273   : > { %v2894_v0 = vadd.f32 %v2233_v63, %v523_v60  ;;  %2237 = vmatmul.mubr.msk.f32.vlgmr.msra.gmra.mxu1 %vm649_vm2, %v599_v59  ;;  %620 = vrot.lane.b32.xlu1 %v508_v58, %s2665_s14 }
 0x274   : > { %623 = vrot.lane.b32.xlu0 %v513_v62, %s2664_s26  ;;  %2241 = vmatprep.mubr.msk.f32.mxu1 %vm2662_vm1, %v2661_v47  ;;  %v590_v10 = vpop.f32.mrf.mxu0 }
 0x275   : > { %v2927_v12 = vadd.f32 %v590_v10, %v523_v60 }
 0x277   : > { %609 = vrot.lane.b32.xlu1 %v600_v1, %s2664_s26 }
 0x278   : > { %604 = vrot.lane.b32.xlu0 %v599_v59, %s2663_s24 }
 0x27b   : > { %602 = vrot.lane.b32.xlu1 %v599_v59, %s2664_s26 }
 0x27c   : > { %625 = vrot.lane.b32.xlu0 %v513_v62, %s2663_s24 }
 0x27f   : > { %606 = vrot.lane.b32.xlu1 %v599_v59, %s2665_s14 }
 0x280   : > { %611 = vrot.lane.b32.xlu0 %v600_v1, %s2663_s24 }
 0x283   : > { %627 = vrot.lane.b32.xlu1 %v513_v62, %s2665_s14 }
 0x287   : > { %613 = vrot.lane.b32.xlu1 %v600_v1, %s2665_s14 }
 0x2e1   : > { %v619_v2 = vpop.permute.xlu1 %618  ;;  %v617_v3 = vpop.permute.xlu0 %616 }
 0x2e2   : > { %2240 = vmatpush3.xpose.msk.msra.mxu1 %vm649_vm2, %v617_v3  ;;  %2245 = vmatpush3.xpose.msk.msra.mxu0 %vm649_vm2, %v619_v2 }
 0x2e3   : > { %2254 = vmatprep.subr.mxu0 %v2661_v47  ;;  %2249 = vmatprep.subr.mxu1 %v2661_v47 }
 0x2e5   : > { %v621_v4 = vpop.permute.xlu1 %620 }
 0x2e6   : > { %v624_v5 = vpop.permute.xlu0 %623 }
 0x2e9   : > { %v610_v6 = vpop.permute.xlu1 %609 }
 0x2ea   : > { %v605_v7 = vpop.permute.xlu0 %604 }
 0x2eb   : > { %2247 = vmatmul.mubr.msk.f32.vlgmr.msra.gmra.mxu0 %vm649_vm2, %v605_v7 }
 0x2ec   : > { %2255 = vmatpush3.xpose.msk.msra.mxu0 %vm649_vm2, %v513_v62  ;;  %2256 = vmatprep.mubr.msk.f32.mxu0 %vm2662_vm1, %v2661_v47 }
 0x2ed   : > { %2264 = vmatprep.subr.mxu0 %v2661_v47  ;;  %v603_v8 = vpop.permute.xlu1 %602 }
 0x2ee   : > { %v626_v9 = vpop.permute.xlu0 %625  ;;  %2242 = vmatmul.mubr.msk.f32.vlgmr.msra.gmra.mxu1 %vm649_vm2, %v603_v8 }
 0x2ef   : > { %2250 = vmatpush3.xpose.msk.msra.mxu1 %vm649_vm2, %v621_v4  ;;  %2257 = vmatmul.mubr.msk.f32.vlgmr.msra.gmra.mxu0 %vm649_vm2, %v600_v1 }
 0x2f0   : > { %2265 = vmatpush3.xpose.msk.msra.mxu0 %vm649_vm2, %v626_v9  ;;  %2266 = vmatprep.mubr.msk.f32.mxu0 %vm2662_vm1, %v2661_v47 }
 0x2f1   : > { %2274 = vmatprep.subr.mxu0 %v2661_v47  ;;  %v607_v11 = vpop.permute.xlu1 %606  ;;  %2251 = vmatprep.mubr.msk.f32.mxu1 %vm2662_vm1, %v2661_v47 }
 0x2f2   : > { %v612_v13 = vpop.permute.xlu0 %611  ;;  %2259 = vmatprep.subr.mxu1 %v2661_v47  ;;  %2252 = vmatmul.mubr.msk.f32.vlgmr.msra.gmra.mxu1 %vm649_vm2, %v607_v11 }
 0x2f3   : > { %2260 = vmatpush3.xpose.msk.msra.mxu1 %vm649_vm2, %v624_v5  ;;  %2267 = vmatmul.mubr.msk.f32.vlgmr.msra.gmra.mxu0 %vm649_vm2, %v612_v13 }
 0x2f4   : > { %2275 = vmatpush3.msra.mxu0 %v2927_v12  ;;  %2261 = vmatprep.mubr.msk.f32.mxu1 %vm2662_vm1, %v2661_v47 }
 0x2f5   : > { %v628_v14 = vpop.permute.xlu1 %627  ;;  %2269 = vmatprep.subr.mxu1 %v2661_v47  ;;  %2276 = vmatprep.mubr.msk.f32.mxu0 %vm2662_vm1, %v2661_v47 }
 0x2f6   : > { %2262 = vmatmul.mubr.msk.f32.vlgmr.msra.gmra.mxu1 %vm649_vm2, %v610_v6  ;;  %2284 = vmatprep.subr.mxu0 %v2661_v47 }
 0x2f7   : > { %2270 = vmatpush3.xpose.msk.msra.mxu1 %vm649_vm2, %v628_v14  ;;  %2271 = vmatprep.mubr.msk.f32.mxu1 %vm2662_vm1, %v2661_v47 }
 0x2f8   : > { %2279 = vmatprep.subr.mxu1 %v2661_v47 }
 0x2f9   : > { %v614_v15 = vpop.permute.xlu1 %613 }
 0x2fa   : > { %2272 = vmatmul.mubr.msk.f32.vlgmr.msra.gmra.mxu1 %vm649_vm2, %v614_v15 }
 0x2fb   : > { %2281 = vmatprep.mubr.msk.f32.mxu1 %vm2662_vm1, %v2661_v47 }
 0x333   : > { %v720_v16 = vpop.f32.mrf.mxu1 }
 0x334   : > { %v1242_v17 = vsel %vm649_vm2, %v720_v16, -inf }
 0x335   : > { %1243 = vmax.xlane.f32.xlu0 %v1242_v17  ;;  %v2238_v18 = vpop.f32.mrf.mxu1 }
 0x3ab   : > { %v868_v19 = vpop.f32.mrf.mxu0 }
 0x3ac   : > { %v1248_v20 = vsel %vm649_vm2, %v868_v19, -inf }
 0x3ad   : > { %v2248_v21 = vpop.f32.mrf.mxu0  ;;  %1249 = vmax.xlane.f32.xlu0 %v1248_v20 }
 0x3ae   : > { %v794_v22 = vpop.f32.mrf.mxu1 }
 0x3af   : > { %v1016_v23 = vpop.f32.mrf.mxu0  ;;  %v1245_v24 = vsel %vm649_vm2, %v794_v22, -inf }
 0x3b0   : > { %1246 = vmax.xlane.f32.xlu1 %v1245_v24  ;;  %v2243_v25 = vpop.f32.mrf.mxu1  ;;  %v1254_v33 = vsel %vm649_vm2, %v1016_v23, -inf }
 0x3b1   : > { %v2258_v26 = vpop.f32.mrf.mxu0 }
 0x3b2   : > { %v942_v27 = vpop.f32.mrf.mxu1 }
 0x3b3   : > { %v1164_v28 = vpop.f32.mrf.mxu0  ;;  %v1251_v29 = vsel %vm649_vm2, %v942_v27, -inf }
 0x3b4   : > { %1252 = vmax.xlane.f32.xlu0 %v1251_v29  ;;  %v2253_v30 = vpop.f32.mrf.mxu1  ;;  %v1260_v37 = vsel %vm649_vm2, %v1164_v28, -inf }
 0x3b5   : > { %v2268_v31 = vpop.f32.mrf.mxu0 }
 0x3b6   : > { %v1090_v32 = vpop.f32.mrf.mxu1 }
 0x3b7   : > { %v1257_v34 = vsel %vm649_vm2, %v1090_v32, -inf }
 0x3b8   : > { %1255 = vmax.xlane.f32.xlu0 %v1254_v33  ;;  %1258 = vmax.xlane.f32.xlu1 %v1257_v34  ;;  %v2263_v35 = vpop.f32.mrf.mxu1 }
 0x3ba   : > { %v2954_v36 = vpop.f32.mrf.mxu1 }
 0x3bb   : > { %v1263_v38 = vsel %vm649_vm2, %v2954_v36, -inf }
 0x3bc   : > { %1261 = vmax.xlane.f32.xlu0 %v1260_v37  ;;  %1264 = vmax.xlane.f32.xlu1 %v1263_v38  ;;  %v2273_v39 = vpop.f32.mrf.mxu1 }
 0x3be   : > { %v1244_v40 = vpop.xlane.xlu0 %1243 }
 0x3bf   : > { %v1266_v41 = vsub.f32 %v720_v16, %v1244_v40 }
 0x3c1   : > { %v1274_v42 = vmul.f32 1.442695, %v1266_v41 }
 0x3c3   : > { %2416 = vpow2.f32 %v1274_v42 }
 0x3d0   : > { %v2417_v43 = vpop.eup %2416 }
 0x3d1   : > { %v1290_v44 = vsel %vm649_vm2, %v2417_v43, 0.0 }
 0x3d2   : > { %1291 = vadd.xlane.f32.xlu0 %v1290_v44 }
 0x436   : > { %v1250_v45 = vpop.xlane.xlu0 %1249 }
 0x437   : > { %v1268_v46 = vsub.f32 %v868_v19, %v1250_v45 }
 0x439   : > { %v1278_v48 = vmul.f32 1.442695, %v1268_v46  ;;  %v1247_v49 = vpop.xlane.xlu1 %1246 }
 0x43a   : > { %v1267_v50 = vsub.f32 %v794_v22, %v1247_v49 }
 0x43b   : > { %2418 = vpow2.f32 %v1278_v48 }
 0x43c   : > { %v1276_v51 = vmul.f32 1.442695, %v1267_v50 }
 0x43d   : > { %v1253_v52 = vpop.xlane.xlu0 %1252 }
 0x43e   : > { %2420 = vpow2.f32 %v1276_v51  ;;  %v1269_v53 = vsub.f32 %v942_v27, %v1253_v52 }
 0x440   : > { %v1280_v54 = vmul.f32 1.442695, %v1269_v53 }
 0x441   : > { %v1256_v55 = vpop.xlane.xlu0 %1255  ;;  %v1259_v56 = vpop.xlane.xlu1 %1258 }
 0x442   : > { %2422 = vpow2.f32 %v1280_v54  ;;  %v1270_v57 = vsub.f32 %v1016_v23, %v1256_v55  ;;  %v1271_v58 = vsub.f32 %v1090_v32, %v1259_v56 }
 0x444   : > { %v1282_v59 = vmul.f32 1.442695, %v1270_v57  ;;  %v1284_v60 = vmul.f32 1.442695, %v1271_v58 }
 0x445   : > { %v1262_v61 = vpop.xlane.xlu0 %1261  ;;  %v1265_v20 = vpop.xlane.xlu1 %1264 }
 0x446   : > { %2424 = vpow2.f32 %v1282_v59  ;;  %v1272_v62 = vsub.f32 %v1164_v28, %v1262_v61  ;;  %v1273_v21 = vsub.f32 %v2954_v36, %v1265_v20 }
 0x447   : > { %2426 = vpow2.f32 %v1284_v60 }
 0x448   : > { %v2960_v63 = vpop.eup %2418  ;;  %v1286_v1 = vmul.f32 1.442695, %v1272_v62  ;;  %v1288_v22 = vmul.f32 1.442695, %v1273_v21 }
 0x449   : > { %v1296_v2 = vsel %vm649_vm2, %v2960_v63, 0.0 }
 0x44a   : > { %2428 = vpow2.f32 %v1286_v1  ;;  %1297 = vadd.xlane.f32.xlu0 %v1296_v2 }
 0x44b   : > { %v2964_v3 = vpop.eup %2420 }
 0x44c   : > { %v1293_v4 = vsel %vm649_vm2, %v2964_v3, 0.0 }
 0x44d   : > { %1294 = vadd.xlane.f32.xlu1 %v1293_v4 }
 0x44f   : > { %v2968_v5 = vpop.eup %2422 }
 0x450   : > { %v1299_v6 = vsel %vm649_vm2, %v2968_v5, 0.0 }
 0x451   : > { %1300 = vadd.xlane.f32.xlu1 %v1299_v6 }
 0x453   : > { %v2972_v7 = vpop.eup %2424 }
 0x454   : > { %v2974_v8 = vpop.eup %2426  ;;  %v1302_v9 = vsel %vm649_vm2, %v2972_v7, 0.0 }
 0x455   : > { %1303 = vadd.xlane.f32.xlu0 %v1302_v9  ;;  %v1305_v10 = vsel %vm649_vm2, %v2974_v8, 0.0 }
 0x456   : > { %1306 = vadd.xlane.f32.xlu1 %v1305_v10 }
 0x457   : > { %v2980_v11 = vpop.eup %2428 }
 0x458   : > { %v1308_v13 = vsel %vm649_vm2, %v2980_v11, 0.0 }
 0x459   : > { %1309 = vadd.xlane.f32.xlu0 %v1308_v13 }
 0x45b   : > { %v1292_v14 = vpop.xlane.xlu0 %1291 }
 0x45c   : > { %2430 = vrcp.f32 %v1292_v14 }
 0x45d   : > { %2432 = vpow2.f32 %v1288_v22 }
 0x467   : > { %633 = vrot.lane.b32.xlu1 %v2927_v12, %s2663_s24 }
 0x469   : > { %v2431_v15 = vpop.eup %2430 }
 0x46a   : > { %v1322_v16 = vmul.f32 %v2431_v15, %v1292_v14  ;;  %v2998_v23 = vpop.eup %2432 }
 0x46b   : > { %636 = vrot.lane.b32.xlu1 %v2927_v12, %s2665_s14  ;;  %v1311_v24 = vsel %vm649_vm2, %v2998_v23, 0.0 }
 0x46c   : > { %v1330_v17 = vsub.f32 2.0, %v1322_v16 }
 0x46e   : > { %v1338_v18 = vmul.f32 %v2431_v15, %v1330_v17 }
 0x46f   : > { %640 = vrot.lane.b32.xlu1 %v2894_v0, %s2664_s26  ;;  %630 = vrot.lane.b32.xlu0 %v2927_v12, %s2664_s26 }
 0x470   : > { %v1346_v19 = vmul.f32 %v2417_v43, %v1338_v18 }
 0x472   : > { %2277 = vmatmul.mubr.msk.f32.vlgmr.msra.gmra.mxu0 %vm649_vm2, %v1346_v19 }
 0x473   : > { %643 = vrot.lane.b32.xlu0 %v2894_v0, %s2663_s24  ;;  %2286 = vmatprep.mubr.msk.f32.mxu0 %vm2662_vm1, %v2661_v47  ;;  %s2586_s24 = scalar_lea.vmem %s2585_s7, 512 }
 0x474   : > { %p2588_p5 = scmp.lt.s32.totalorder %s2586_s24, %s2580_s22 }
 0x476   : > { %p2589_p7 = por %p2588_p5, %p2587_p3 }
 0x478   : > { %p2590_p13 = pnand %p2589_p7, %p2583_p8 }
 0x493   : > { %1312 = vadd.xlane.f32.xlu1 %v1311_v24 }
 0x4a4   : > { %646 = vrot.lane.b32.xlu1 %v2894_v0, %s2665_s14 }
 0x4d3   : > { %v1298_v12 = vpop.xlane.xlu0 %1297 }
 0x4d4   : > { %2434 = vrcp.f32 %v1298_v12 }
 0x4d6   : > { %v1295_v25 = vpop.xlane.xlu1 %1294 }
 0x4d7   : > { %2436 = vrcp.f32 %v1295_v25 }
 0x4da   : > { %v1301_v26 = vpop.xlane.xlu1 %1300 }
 0x4db   : > { %2438 = vrcp.f32 %v1301_v26 }
 0x4de   : > { %v1304_v27 = vpop.xlane.xlu0 %1303 }
 0x4df   : > { %2440 = vrcp.f32 %v1304_v27  ;;  %v1307_v28 = vpop.xlane.xlu1 %1306 }
 0x4e0   : > { %2442 = vrcp.f32 %v1307_v28 }
 0x4e1   : > { %v2435_v29 = vpop.eup %2434 }
 0x4e2   : > { %v1324_v30 = vmul.f32 %v2435_v29, %v1298_v12  ;;  %v1310_v31 = vpop.xlane.xlu0 %1309 }
 0x4e3   : > { %2444 = vrcp.f32 %v1310_v31  ;;  %v634_v32 = vpop.permute.xlu1 %633 }
 0x4e4   : > { %v2437_v33 = vpop.eup %2436  ;;  %v1332_v34 = vsub.f32 2.0, %v1324_v30  ;;  %2285 = vmatpush3.msra.mxu0 %v634_v32 }
 0x4e5   : > { %v1323_v35 = vmul.f32 %v2437_v33, %v1295_v25  ;;  %2294 = vmatprep.subr.mxu0 %v2661_v47 }
 0x4e6   : > { %v1340_v36 = vmul.f32 %v2435_v29, %v1332_v34  ;;  %v631_v37 = vpop.permute.xlu0 %630 }
 0x4e7   : > { %v1331_v38 = vsub.f32 2.0, %v1323_v35  ;;  %2280 = vmatpush3.msra.mxu1 %v631_v37  ;;  %v637_v45 = vpop.permute.xlu1 %636 }
 0x4e8   : > { %v2439_v39 = vpop.eup %2438  ;;  %v1348_v40 = vmul.f32 %v2960_v63, %v1340_v36  ;;  %2289 = vmatprep.subr.mxu1 %v2661_v47 }
 0x4e9   : > { %v1339_v41 = vmul.f32 %v2437_v33, %v1331_v38  ;;  %v1325_v42 = vmul.f32 %v2439_v39, %v1301_v26 }
 0x4ea   : > { %2287 = vmatmul.mubr.msk.f32.vlgmr.msra.gmra.mxu0 %vm649_vm2, %v1348_v40  ;;  %v644_v63 = vpop.permute.xlu0 %643 }
 0x4eb   : > { %v1347_v43 = vmul.f32 %v2964_v3, %v1339_v41  ;;  %v1333_v44 = vsub.f32 2.0, %v1325_v42  ;;  %2295 = vmatpush3.msra.mxu0 %v2894_v0  ;;  %2296 = vmatprep.mubr.msk.f32.mxu0 %vm2662_vm1, %v2661_v47  ;;  %v641_v57 = vpop.permute.xlu1 %640 }
 0x4ec   : > { %v2441_v46 = vpop.eup %2440  ;;  %2304 = vmatprep.subr.mxu0 %v2661_v47 }
 0x4ed   : > { %v2443_v48 = vpop.eup %2442  ;;  %v1341_v49 = vmul.f32 %v2439_v39, %v1333_v44  ;;  %v1326_v50 = vmul.f32 %v2441_v46, %v1304_v27  ;;  %2282 = vmatmul.mubr.msk.f32.vlgmr.msra.gmra.mxu1 %vm649_vm2, %v1347_v43 }
 0x4ee   : > { %v1327_v51 = vmul.f32 %v2443_v48, %v1307_v28  ;;  %2290 = vmatpush3.msra.mxu1 %v637_v45  ;;  %2291 = vmatprep.mubr.msk.f32.mxu1 %vm2662_vm1, %v2661_v47 }
 0x4ef   : > { %v1349_v52 = vmul.f32 %v2968_v5, %v1341_v49  ;;  %v1334_v53 = vsub.f32 2.0, %v1326_v50  ;;  %2299 = vmatprep.subr.mxu1 %v2661_v47 }
 0x4f0   : > { %v2445_v0 = vpop.eup %2444  ;;  %v1335_v54 = vsub.f32 2.0, %v1327_v51 }
 0x4f1   : > { %v1342_v55 = vmul.f32 %v2441_v46, %v1334_v53  ;;  %v1328_v56 = vmul.f32 %v2445_v0, %v1310_v31  ;;  %2292 = vmatmul.mubr.msk.f32.vlgmr.msra.gmra.mxu1 %vm649_vm2, %v1349_v52 }
 0x4f2   : > { %v1343_v58 = vmul.f32 %v2443_v48, %v1335_v54  ;;  %2300 = vmatpush3.msra.mxu1 %v641_v57  ;;  %2301 = vmatprep.mubr.msk.f32.mxu1 %vm2662_vm1, %v2661_v47 }
 0x4f3   : > { %v1350_v59 = vmul.f32 %v2972_v7, %v1342_v55  ;;  %v1336_v60 = vsub.f32 2.0, %v1328_v56  ;;  %2309 = vmatprep.subr.mxu1 %v2661_v47 }
 0x4f4   : > { %v1351_v61 = vmul.f32 %v2974_v8, %v1343_v58 }
 0x4f5   : > { %v1344_v62 = vmul.f32 %v2445_v0, %v1336_v60  ;;  %2297 = vmatmul.mubr.msk.f32.vlgmr.msra.gmra.mxu0 %vm649_vm2, %v1350_v59 }
 0x4f6   : > { %2302 = vmatmul.mubr.msk.f32.vlgmr.msra.gmra.mxu1 %vm649_vm2, %v1351_v61  ;;  %2305 = vmatpush3.msra.mxu0 %v644_v63 }
 0x4f7   : > { %v1352_v1 = vmul.f32 %v2980_v11, %v1344_v62  ;;  %2306 = vmatprep.mubr.msk.f32.mxu0 %vm2662_vm1, %v2661_v47  ;;  %2311 = vmatprep.mubr.msk.f32.mxu1 %vm2662_vm1, %v2661_v47 }
 0x4f9   : > { %2307 = vmatmul.mubr.msk.f32.vlgmr.msra.gmra.mxu0 %vm649_vm2, %v1352_v1 }
 0x51c   : > { %v1313_v2 = vpop.xlane.xlu1 %1312 }
 0x51d   : > { %2446 = vrcp.f32 %v1313_v2 }
 0x520   : > { %v647_v3 = vpop.permute.xlu1 %646 }
 0x521   : > { %2310 = vmatpush3.msra.mxu1 %v647_v3 }
 0x52a   : > { %v2447_v4 = vpop.eup %2446 }
 0x52b   : > { %v1329_v5 = vmul.f32 %v2447_v4, %v1313_v2 }
 0x52d   : > { %v1337_v6 = vsub.f32 2.0, %v1329_v5 }
 0x52f   : > { %v1345_v7 = vmul.f32 %v2447_v4, %v1337_v6 }
 0x531   : > { %v1353_v8 = vmul.f32 %v2998_v23, %v1345_v7 }
 0x532   : > { %v1423_v9 = vpop.f32.mrf.mxu0 }
 0x533   : > { %2312 = vmatmul.mubr.msk.f32.vlgmr.msra.gmra.mxu1 %vm649_vm2, %v1353_v8 }
 0x534   : > { %v2278_v10 = vpop.f32.mrf.mxu0 }
 0x5aa   : > { %v1569_v11 = vpop.f32.mrf.mxu0 }
 0x5ac   : > { %v2288_v13 = vpop.f32.mrf.mxu0 }
 0x5ad   : > { %v1496_v14 = vpop.f32.mrf.mxu1 }
 0x5ae   : > { %1939 = vrot.lane.b32.xlu0 %v1496_v14, %s2666_s28 }
 0x5af   : > { %v2283_v47 = vpop.f32.mrf.mxu1 }
 0x5b1   : > { %v1642_v15 = vpop.f32.mrf.mxu1 }
 0x5b2   : > { %1943 = vrot.lane.b32.xlu0 %v1569_v11, %s2667_s6 }
 0x5b3   : > { %v2293_v16 = vpop.f32.mrf.mxu1 }
 0x5b5   : > { %v1715_v17 = vpop.f32.mrf.mxu0 }
 0x5b6   : > { %v1788_v18 = vpop.f32.mrf.mxu1  ;;  %1947 = vrot.lane.b32.xlu0 %v1642_v15, %s2668_s8 }
 0x5b7   : > { %1956 = vrot.lane.b32.xlu1 %v1788_v18, %s2666_s28  ;;  %v2298_v19 = vpop.f32.mrf.mxu0 }
 0x5b8   : > { %v2303_v20 = vpop.f32.mrf.mxu1 }
 0x5b9   : > { %v1861_v21 = vpop.f32.mrf.mxu0 }
 0x5bb   : > { %1960 = vrot.lane.b32.xlu1 %v1861_v21, %s2667_s6  ;;  %v2308_v22 = vpop.f32.mrf.mxu0 }
 0x5f3   : > { %v1934_v23 = vpop.f32.mrf.mxu1 }
 0x5f4   : > { %1964 = vrot.lane.b32.xlu1 %v1934_v23, %s2668_s8 }
 0x5f5   : > { %v2313_v24 = vpop.f32.mrf.mxu1 }
 0x620   : > { %v1940_v12 = vpop.permute.xlu0 %1939 }
 0x621   : > { %v1950_v26 = vsel %vm649_vm2, %v1423_v9, %v1940_v12 }
 0x624   : > { %v1944_v25 = vpop.permute.xlu0 %1943 }
 0x625   : > { %v1952_v27 = vsel %vm1951_vm3, %v1950_v26, %v1944_v25 }
 0x628   : > { %v1948_v28 = vpop.permute.xlu0 %1947 }
 0x629   : > { %v1954_v29 = vsel %vm1953_vm4, %v1952_v27, %v1948_v28  ;;  %v1957_v30 = vpop.permute.xlu1 %1956 }
 0x62a   : > { %1970 = vst.msk [vmem:[%s298_s23] sm:$0xff] %vm304_vm0, %v1954_v29  ;;  %v1967_v32 = vsel %vm649_vm2, %v1715_v17, %v1957_v30 }
 0x62d   : > { %v1961_v31 = vpop.permute.xlu1 %1960 }
 0x62e   : > { %v1968_v33 = vsel %vm1951_vm3, %v1967_v32, %v1961_v31 }
 0x666   : > { %v1965_v34 = vpop.permute.xlu1 %1964 }
 0x667   : > { %v1969_v35 = vsel %vm1953_vm4, %v1968_v33, %v1965_v34 }
 0x668   : > { %1971 = vst.msk [vmem:[%s298_s23 + $0x8] sm:$0xff] %vm304_vm0, %v1969_v35 }
 0x669   : > { %2593 = shalt.err (!%p2590_p13)
}
 0x66a   : > { %s2594_s26 = scalar_lea.hbm %s3048_s29, 256  ;;  %s2598_s8 = scalar_lea.hbm %s3099_s5, 512 }
 0x66b   : > { %p2595_p10 = scmp.ne.s32.totalorder %s3048_s29, %s2594_s26  ;;  %p2599_p0 = scmp.lt.s32.totalorder %s3048_s29, %s3099_s5 }
 0x66c   : > { %p2600_p1 = scmp.lt.s32.totalorder %s2598_s8, %s2594_s26 }
 0x66d   : > { %p2596_p9 = pnand %p2595_p10, %p3119_p4 }
 0x66e   : > { %p2601_p2 = por %p2600_p1, %p2599_p0 }
 0x66f   : > { %p2597_p11 = pneg %p2596_p9 }
 0x671   : > { %p2602_p12 = pnand %p2601_p2, %p2597_p11 }
 0x673   : > { %2605 = shalt.err (!%p2602_p12)
}
 0x674   : > { %s2670_s30 = smov 128  }
 0x675   : > { %2332 = dma.vmem_to_hbm [thread:$0]  (%p3119_p4), %s3042_s27, 256, %s3048_s29, %s1973_s13, %s2670_s30, %s2670_s30, %s2666_s28  }
 0x676 PF: > { %s2001_s10 = sand.u32 1, %s2640_s18   ;;  %p3120_p6 = scmp.ne.s32.totalorder %s3106_s25, 0 }
 0x677   : > { %p3121_p8 = scmp.ge.s32.totalorder %s2652_s21, 2  ;;  %s2002_s22 = scalar_lea.sflag [#allocation4], %s2001_s10 }
 0x679   : > { %p2352_p3 = pnand %p3121_p8, %p3120_p6 }
 0x67b   : > { %p2353_p5 = pneg %p2352_p3 }
 0x67d   : > { %2635 = dma.done.wait (%p2353_p5), %s2002_s22, 256  }
 0x67e   : > { %2637 = vsyncadd (%p2353_p5), %s2002_s22, 4294967040  ;;  %p20_p7 = scmp.ge.s32.totalorder %s2798_s9, 4   ;;  %s3122_s18 = smov %s2644_s19 }
 0x67f   : > { %s3123_s19 = smov %s2648_s20  ;;  %s3124_s20 = smov %s2814_s12 }
 0x680   : > { %s3125_s21 = smov %s2798_s9  ;;  %22 = sbr.rel (!%p20_p7) target bundleno = 7 (0x7), region = 101 }
 0x685   :  { %2007 = vsyncpa [#allocation3], 1 }
 0x686   :  { %2009 = vsyncpa [#allocation3 + $0x1], 1 }
 0x687   :  { %2010 = vsyncpa [#allocation6], 1 }
 0x688   :  { %2011 = vsyncpa [#allocation9], 1 }
 0x689   :  { %2012 = vsyncpa [#allocation4], 1 }
 0x68a   :  { %2014 = vsyncpa [#allocation4 + $0x1], 1 }

</bundles_post_ra>
